<compile_context>
chip_gen: v7x
topology: tpu7x:2x2x1
jax: 0.10.0
libtpu: 0.0.40
codegen_flags: <defaults>
</compile_context>

<pallas_src>
import numpy as np
import jax
import jax.numpy as jnp
from jax.experimental import pallas as pl
from jax.experimental.pallas import tpu as pltpu

F32 = jnp.float32
EPS_NORM = 1e-12   # F.normalize eps
EPS_BN = 1e-5      # BatchNorm1d eps

# ------------------------- model hyper-parameters (small) -------------------
DIM_IN = 20
DIM_INNER = 64
LAYERS_MP = 3
NUM_NODE_TARGETS = 6
NUM_GRAPH_TARGETS = 4
MULTI_HEAD_DIM = 16
NUM_GRAPHS = 3
NODES_PER_GRAPH = 8                    # last node of each graph is the virtual node
N_NODES = NUM_GRAPHS * NODES_PER_GRAPH
N_REAL = N_NODES - NUM_GRAPHS
N_OUT_ROWS = N_REAL + NUM_GRAPHS       # node rows (virtual dropped) + graph rows
T_TOTAL = NUM_NODE_TARGETS + NUM_GRAPH_TARGETS
TH = NUM_NODE_TARGETS * MULTI_HEAD_DIM

# ring (both directions) + virtual-node (both directions) per graph
N_EDGES = NUM_GRAPHS * 4 * (NODES_PER_GRAPH - 1)           # 84


def _align8(r):
    return (r + 7) & ~7


E_PAD = _align8(N_EDGES)                                     # 88
PACK_W = 4 * DIM_INNER                                       # 256 lanes

# ----------------------- packed weight-buffer row layout ---------------------
_r = 0
R_PRE_W = _r;   _r = _align8(_r + DIM_IN)
R_PRE_B = _r;   _r = _align8(_r + 1)
MP_STRIDE = _align8(DIM_INNER + 1)                           # 72 rows / layer
R_MP = _r;      _r = _align8(_r + LAYERS_MP * MP_STRIDE)
R_NH_W1 = _r;   _r = _align8(_r + DIM_INNER)
R_NH_B1 = _r;   _r = _align8(_r + 1)
R_NH_W2 = _r;   _r = _align8(_r + 1)
R_NH_B2 = _r;   _r = _align8(_r + 1)
R_GP_W1 = _r;   _r = _align8(_r + DIM_INNER)
R_GP_B1 = _r;   _r = _align8(_r + 1)
R_GP_W2 = _r;   _r = _align8(_r + DIM_INNER)
R_GP_B2 = _r;   _r = _align8(_r + 1)
R_SSRC = _r;    _r = _align8(_r + E_PAD)
R_SDST = _r;    _r = _align8(_r + E_PAD)
R_SCAT = _r;    _r = _align8(_r + N_NODES)
R_POOL = _r;    _r = _align8(_r + NUM_GRAPHS)
R_SEG = _r;     _r = _align8(_r + TH)
R_SEGT = _r;    _r = _align8(_r + NUM_NODE_TARGETS)
R_SEL = _r;     _r = _align8(_r + N_OUT_ROWS)
R_GPLACE = _r;  _r = _align8(_r + N_OUT_ROWS)
R_CN = _r;      _r = _align8(_r + NUM_NODE_TARGETS)
R_CG = _r;      _r = _align8(_r + NUM_GRAPH_TARGETS)
TOTAL_ROWS = _r                                              # 856


def _l2n(v):
    # F.normalize(p=2): v / max(||v||, eps) == v * rsqrt(max(sum(v^2), eps^2))
    ss = jnp.sum(v * v, axis=-1, keepdims=True)
    return v * jax.lax.rsqrt(jnp.maximum(ss, EPS_NORM * EPS_NORM))


# --------------------------- the single fused kernel -------------------------
def _gpse_fused_kernel(x_ref, w_ref, pred_ref):
    D = DIM_INNER
    N = N_NODES
    T = NUM_NODE_TARGETS
    Tg = NUM_GRAPH_TARGETS

    # ----- pre_mp: Linear(no bias) -> BN(eval, scale folded into W) -> ReLU -> L2
    pre_w = w_ref[R_PRE_W:R_PRE_W + DIM_IN, 0:D]
    pre_b = w_ref[R_PRE_B:R_PRE_B + 1, 0:D]
    x = jnp.dot(x_ref[...], pre_w, preferred_element_type=F32) + pre_b
    x = _l2n(jnp.maximum(x, 0.0))

    # ----- static edge gather / scatter matrices (one-hot, padded rows are 0)
    s_src = w_ref[R_SSRC:R_SSRC + E_PAD, 0:N]       # [E, N] one-hot of src node
    s_dst = w_ref[R_SDST:R_SDST + E_PAD, 0:N]       # [E, N] one-hot of dst node
    scat = w_ref[R_SCAT:R_SCAT + N, 0:E_PAD]        # [N, E] = s_dst^T

    # ----- message-passing stack (ResGatedGCN + skipsum), statically unrolled
    for l in range(LAYERS_MP):
        base = R_MP + l * MP_STRIDE
        mp_w = w_ref[base:base + D, 0:4 * D]                 # [k|q|v*sc|skip*sc]
        mp_b = w_ref[base + D:base + D + 1, 0:4 * D]         # [bk|bq|bv*sc|shift]
        kqvs = jnp.dot(x, mp_w, preferred_element_type=F32) + mp_b
        k = kqvs[:, 0 * D:1 * D]
        q = kqvs[:, 1 * D:2 * D]
        v = kqvs[:, 2 * D:3 * D]                             # BN scale folded in
        skip = kqvs[:, 3 * D:4 * D]                          # BN scale+shift folded in

        # out[i] = sum_{j->i} sigmoid(k[i] + q[j]) * v[j] + skip[i]
        e_kq = (jnp.dot(s_dst, k, preferred_element_type=F32)
                + jnp.dot(s_src, q, preferred_element_type=F32))   # [E, D]
        e_v = jnp.dot(s_src, v, preferred_element_type=F32)         # [E, D]
        msg = jax.nn.sigmoid(e_kq) * e_v                             # [E, D]
        agg = jnp.dot(scat, msg, preferred_element_type=F32)         # [N, D]

        out = _l2n(jnp.maximum(agg + skip, 0.0))             # ReLU -> L2norm
        x = x + out                                          # skipsum residual

    x = _l2n(x)                                              # final_l2norm

    # ----- node target heads (all heads evaluated jointly) ---------------------
    nh_w1 = w_ref[R_NH_W1:R_NH_W1 + D, 0:TH]
    nh_b1 = w_ref[R_NH_B1:R_NH_B1 + 1, 0:TH]
    nh_w2 = w_ref[R_NH_W2:R_NH_W2 + 1, 0:TH]
    nh_b2 = w_ref[R_NH_B2:R_NH_B2 + 1, 0:T]
    seg = w_ref[R_SEG:R_SEG + TH, 0:T]                       # block-diag 0/1
    segT = w_ref[R_SEGT:R_SEGT + T, 0:TH]

    h = jnp.maximum(jnp.dot(x, nh_w1, preferred_element_type=F32) + nh_b1, 0.0)
    ss = jnp.dot(h * h, seg, preferred_element_type=F32)     # per-head sum sq [N,T]
    inv = jax.lax.rsqrt(jnp.maximum(ss, EPS_NORM * EPS_NORM))
    hn = h * jnp.dot(inv, segT, preferred_element_type=F32)  # per-head L2 norm
    node_feature = (jnp.dot(hn * nh_w2, seg, preferred_element_type=F32)
                    + nh_b2)                                 # [N, T]

    # ----- graph head: global add pool (incl. virtual node) -> MLP -------------
    pool = w_ref[R_POOL:R_POOL + NUM_GRAPHS, 0:N]
    gp_w1 = w_ref[R_GP_W1:R_GP_W1 + D, 0:D]
    gp_b1 = w_ref[R_GP_B1:R_GP_B1 + 1, 0:D]
    gp_w2 = w_ref[R_GP_W2:R_GP_W2 + D, 0:Tg]
    gp_b2 = w_ref[R_GP_B2:R_GP_B2 + 1, 0:Tg]
    ge = jnp.dot(pool, x, preferred_element_type=F32)        # [G, D]
    g = _l2n(jnp.maximum(jnp.dot(ge, gp_w1, preferred_element_type=F32) + gp_b1,
                         0.0))
    graph_feature = jnp.dot(g, gp_w2, preferred_element_type=F32) + gp_b2  # [G, Tg]

    # ----- _apply_index glue for `pred` (0/1 placement matmuls, single store)
    sel = w_ref[R_SEL:R_SEL + N_OUT_ROWS, 0:N]               # drop virtual nodes
    gpl = w_ref[R_GPLACE:R_GPLACE + N_OUT_ROWS, 0:NUM_GRAPHS]
    cn = w_ref[R_CN:R_CN + T, 0:T_TOTAL]                     # cols [0, T)
    cg = w_ref[R_CG:R_CG + Tg, 0:T_TOTAL]                    # cols [T, T+Tg)
    pred_ref[...] = (
        jnp.dot(jnp.dot(sel, node_feature, preferred_element_type=F32), cn,
                preferred_element_type=F32)
        + jnp.dot(jnp.dot(gpl, graph_feature, preferred_element_type=F32), cg,
                  preferred_element_type=F32))


def gpse_pred(x, w_packed):
    return pl.pallas_call(
        _gpse_fused_kernel,
        grid=(1,),
        in_specs=[pl.BlockSpec((N_NODES, DIM_IN), lambda i: (0, 0)),
                  pl.BlockSpec((TOTAL_ROWS, PACK_W), lambda i: (0, 0))],
        out_specs=pl.BlockSpec((N_OUT_ROWS, T_TOTAL), lambda i: (0, 0)),
        out_shape=jax.ShapeDtypeStruct((N_OUT_ROWS, T_TOTAL), F32),
        compiler_params=pltpu.CompilerParams(dimension_semantics=("arbitrary",)),
    )(x, w_packed)


def assemble_true(y, y_graph, keep_idx):
    # `true` is pure input re-arrangement (no model weights) -> plain XLA ops.
    node_true = y[keep_idx]
    return jnp.vstack([
        jnp.pad(node_true, ((0, 0), (0, NUM_GRAPH_TARGETS))),
        jnp.pad(y_graph, ((0, 0), (NUM_NODE_TARGETS, 0)))])


def gpse_forward(x, w_packed, y, y_graph, keep_idx):
    pred = gpse_pred(x, w_packed)
    true = assemble_true(y, y_graph, keep_idx)
    return pred, true


# ----------------------------- parameter init --------------------------------
def build_params(key):
    keys = iter(jax.random.split(key, 128))

    def lin(din, dout, bias=True):
        kw, kb = next(keys), next(keys)
        w = jax.random.normal(kw, (din, dout), F32) * (1.0 / np.sqrt(din))
        b = (jax.random.normal(kb, (dout,), F32) * 0.05) if bias \
            else jnp.zeros((dout,), F32)
        return w, b

    def bn(d):
        k1, k2, k3, k4 = jax.random.split(next(keys), 4)
        gamma = 1.0 + 0.1 * jax.random.normal(k1, (d,), F32)
        beta = 0.1 * jax.random.normal(k2, (d,), F32)
        rmean = 0.1 * jax.random.normal(k3, (d,), F32)
        rvar = 0.5 + jax.random.uniform(k4, (d,), F32)
        scale = gamma / jnp.sqrt(rvar + EPS_BN)
        shift = beta - rmean * scale
        return scale, shift

    raw = {}
    raw['pre_w'], _ = lin(DIM_IN, DIM_INNER, bias=False)
    raw['pre_scale'], raw['pre_shift'] = bn(DIM_INNER)

    for name in ('mp_wk', 'mp_wq', 'mp_wv', 'mp_ws',
                 'mp_bk', 'mp_bq', 'mp_bv', 'mp_scale', 'mp_shift'):
        raw[name] = []
    for _ in range(LAYERS_MP):
        wk, bk = lin(DIM_INNER, DIM_INNER)
        wq, bq = lin(DIM_INNER, DIM_INNER)
        wv, bv = lin(DIM_INNER, DIM_INNER)
        ws, _ = lin(DIM_INNER, DIM_INNER, bias=False)
        sc, sh = bn(DIM_INNER)
        raw['mp_wk'].append(wk); raw['mp_wq'].append(wq)
        raw['mp_wv'].append(wv); raw['mp_ws'].append(ws)
        raw['mp_bk'].append(bk); raw['mp_bq'].append(bq); raw['mp_bv'].append(bv)
        raw['mp_scale'].append(sc); raw['mp_shift'].append(sh)

    for name in ('nh_w1', 'nh_b1', 'nh_w2', 'nh_b2'):
        raw[name] = []
    for _ in range(NUM_NODE_TARGETS):
        w1, b1 = lin(DIM_INNER, MULTI_HEAD_DIM)
        w2, b2 = lin(MULTI_HEAD_DIM, 1)
        raw['nh_w1'].append(w1); raw['nh_b1'].append(b1)
        raw['nh_w2'].append(w2); raw['nh_b2'].append(b2)

    raw['gp_w1'], raw['gp_b1'] = lin(DIM_INNER, DIM_INNER)
    raw['gp_w2'], raw['gp_b2'] = lin(DIM_INNER, NUM_GRAPH_TARGETS)
    return raw


# ------------------------------ graph topology -------------------------------
def build_graph():
    src_l, dst_l = [], []
    for g in range(NUM_GRAPHS):
        base = g * NODES_PER_GRAPH
        real = NODES_PER_GRAPH - 1          # last node is the virtual node
        for i in range(real):
            j = (i + 1) % real
            src_l += [base + i, base + j]; dst_l += [base + j, base + i]
        vn = base + real
        for i in range(real):
            src_l += [base + i, vn]; dst_l += [vn, base + i]
    src = np.asarray(src_l, np.int64)
    dst = np.asarray(dst_l, np.int64)
    assert len(src) == N_EDGES
    batch = np.repeat(np.arange(NUM_GRAPHS), NODES_PER_GRAPH)
    keep_idx = np.concatenate([np.where(batch == g)[0][:-1]
                               for g in range(NUM_GRAPHS)])     # drop virtual nodes

    T, H, Tg = NUM_NODE_TARGETS, MULTI_HEAD_DIM, NUM_GRAPH_TARGETS
    mats = {}
    s_src = np.zeros((E_PAD, N_NODES), np.float32)
    s_src[np.arange(N_EDGES), src] = 1.0
    s_dst = np.zeros((E_PAD, N_NODES), np.float32)
    s_dst[np.arange(N_EDGES), dst] = 1.0
    scat = np.zeros((N_NODES, E_PAD), np.float32)
    scat[dst, np.arange(N_EDGES)] = 1.0
    pool = np.zeros((NUM_GRAPHS, N_NODES), np.float32)
    pool[batch, np.arange(N_NODES)] = 1.0                    # global_add_pool
    seg = np.zeros((T * H, T), np.float32)
    for t in range(T):
        seg[t * H:(t + 1) * H, t] = 1.0
    sel = np.zeros((N_OUT_ROWS, N_NODES), np.float32)
    sel[np.arange(N_REAL), keep_idx] = 1.0
    gplace = np.zeros((N_OUT_ROWS, NUM_GRAPHS), np.float32)
    gplace[N_REAL + np.arange(NUM_GRAPHS), np.arange(NUM_GRAPHS)] = 1.0
    cn = np.zeros((T, T + Tg), np.float32)
    cn[np.arange(T), np.arange(T)] = 1.0
    cg = np.zeros((Tg, T + Tg), np.float32)
    cg[np.arange(Tg), T + np.arange(Tg)] = 1.0
    mats.update(s_src=s_src, s_dst=s_dst, scat=scat, pool=pool,
                seg=seg, segT=np.ascontiguousarray(seg.T),
                sel=sel, gplace=gplace, cn=cn, cg=cg)
    return src, dst, batch, keep_idx, mats


# ------------------- host-side packing (one DMA for everything) --------------
def pack_buffer(raw, mats):
    buf = np.zeros((TOTAL_ROWS, PACK_W), np.float32)

    def put(row, arr):
        arr = np.asarray(arr, np.float32)
        if arr.ndim == 1:
            arr = arr[None, :]
        buf[row:row + arr.shape[0], :arr.shape[1]] = arr

    # pre_mp: BN(eval) scale folded into the bias-free linear weight
    put(R_PRE_W, np.asarray(raw['pre_w']) * np.asarray(raw['pre_scale'])[None, :])
    put(R_PRE_B, raw['pre_shift'])

    # mp layers: [k | q | v*scale | skip*scale], bias [bk | bq | bv*scale | shift]
    for l in range(LAYERS_MP):
        sc = np.asarray(raw['mp_scale'][l])
        sh = np.asarray(raw['mp_shift'][l])
        w = np.concatenate([np.asarray(raw['mp_wk'][l]),
                            np.asarray(raw['mp_wq'][l]),
                            np.asarray(raw['mp_wv'][l]) * sc[None, :],
                            np.asarray(raw['mp_ws'][l]) * sc[None, :]], axis=1)
        b = np.concatenate([np.asarray(raw['mp_bk'][l]),
                            np.asarray(raw['mp_bq'][l]),
                            np.asarray(raw['mp_bv'][l]) * sc,
                            sh], axis=0)
        put(R_MP + l * MP_STRIDE, w)
        put(R_MP + l * MP_STRIDE + DIM_INNER, b)

    # node target heads (concatenated across heads)
    put(R_NH_W1, np.concatenate([np.asarray(w) for w in raw['nh_w1']], axis=1))
    put(R_NH_B1, np.concatenate([np.asarray(b) for b in raw['nh_b1']], axis=0))
    put(R_NH_W2, np.concatenate([np.asarray(w).reshape(-1) for w in raw['nh_w2']]))
    put(R_NH_B2, np.concatenate([np.asarray(b) for b in raw['nh_b2']], axis=0))

    # graph head
    put(R_GP_W1, raw['gp_w1']); put(R_GP_B1, raw['gp_b1'])
    put(R_GP_W2, raw['gp_w2']); put(R_GP_B2, raw['gp_b2'])

    # static 0/1 helper matrices
    put(R_SSRC, mats['s_src']); put(R_SDST, mats['s_dst']); put(R_SCAT, mats['scat'])
    put(R_POOL, mats['pool'])
    put(R_SEG, mats['seg']); put(R_SEGT, mats['segT'])
    put(R_SEL, mats['sel']); put(R_GPLACE, mats['gplace'])
    put(R_CN, mats['cn']); put(R_CG, mats['cg'])
    return jnp.asarray(buf)


# ----------------------- pure-JAX reference (for checking) -------------------
def gpse_reference(raw, x, src, dst, batch, keep_idx, y, y_graph):
    hp = jax.lax.Precision.HIGHEST

    def l2n(v):
        nrm = jnp.sqrt(jnp.sum(v * v, axis=-1, keepdims=True))
        return v / jnp.maximum(nrm, EPS_NORM)

    # pre_mp (eval-mode BN applied explicitly; unfolded parameters)
    h = jnp.dot(x, raw['pre_w'], precision=hp)
    h = h * raw['pre_scale'] + raw['pre_shift']
    xx = l2n(jnp.maximum(h, 0.0))

    for l in range(LAYERS_MP):
        k = jnp.dot(xx, raw['mp_wk'][l], precision=hp) + raw['mp_bk'][l]
        q = jnp.dot(xx, raw['mp_wq'][l], precision=hp) + raw['mp_bq'][l]
        v = jnp.dot(xx, raw['mp_wv'][l], precision=hp) + raw['mp_bv'][l]
        skip = jnp.dot(xx, raw['mp_ws'][l], precision=hp)
        gate = jax.nn.sigmoid(k[dst] + q[src])
        msg = gate * v[src]
        agg = jnp.zeros_like(xx).at[dst].add(msg)
        out = (agg + skip) * raw['mp_scale'][l] + raw['mp_shift'][l]
        out = l2n(jnp.maximum(out, 0.0))
        xx = xx + out
    xx = l2n(xx)

    feats = []
    for t in range(NUM_NODE_TARGETS):
        ht = jnp.maximum(jnp.dot(xx, raw['nh_w1'][t], precision=hp)
                         + raw['nh_b1'][t], 0.0)
        ht = l2n(ht)
        feats.append(jnp.dot(ht, raw['nh_w2'][t], precision=hp) + raw['nh_b2'][t])
    node_feature = jnp.concatenate(feats, axis=1)

    ge = jnp.zeros((NUM_GRAPHS, DIM_INNER), F32).at[batch].add(xx)
    g = l2n(jnp.maximum(jnp.dot(ge, raw['gp_w1'], precision=hp) + raw['gp_b1'], 0.0))
    graph_feature = jnp.dot(g, raw['gp_w2'], precision=hp) + raw['gp_b2']

    node_pred, node_true = node_feature[keep_idx], y[keep_idx]
    Tn, Tg = NUM_NODE_TARGETS, NUM_GRAPH_TARGETS
    pred = jnp.vstack([jnp.pad(node_pred, ((0, 0), (0, Tg))),
                       jnp.pad(graph_feature, ((0, 0), (Tn, 0)))])
    true = jnp.vstack([jnp.pad(node_true, ((0, 0), (0, Tg))),
                       jnp.pad(y_graph, ((0, 0), (Tn, 0)))])
    return pred, true


# ------------------------------------ main ------------------------------------
if __name__ == "__main__":
    key = jax.random.PRNGKey(0)
    kp, kx, ky, kyg = jax.random.split(key, 4)
    raw = build_params(kp)
    src, dst, batch, keep_idx, mats = build_graph()
    w_packed = pack_buffer(raw, mats)

    x = jax.random.normal(kx, (N_NODES, DIM_IN), F32)
    y = jax.random.normal(ky, (N_NODES, NUM_NODE_TARGETS), F32)
    y_graph = jax.random.normal(kyg, (NUM_GRAPHS, NUM_GRAPH_TARGETS), F32)

    pred, true = gpse_forward(x, w_packed, y, y_graph, keep_idx)
    jax.block_until_ready(pred)
    jax.block_until_ready(true)

    exp_shape = (N_OUT_ROWS, T_TOTAL)
    assert pred.shape == exp_shape, pred.shape
    assert true.shape == exp_shape, true.shape
    assert bool(jnp.all(jnp.isfinite(pred)))
    assert bool(jnp.all(jnp.isfinite(true)))

    # correctness check vs. an un-fused, un-folded pure-JAX reference
    pred_ref, true_ref = gpse_reference(raw, x, src, dst, batch, keep_idx, y, y_graph)
    assert bool(jnp.allclose(pred, pred_ref, atol=2e-2, rtol=2e-2)), \
        float(jnp.max(jnp.abs(pred - pred_ref)))
    assert bool(jnp.allclose(true, true_ref, atol=1e-5, rtol=1e-5))

    print("KERNEL_OK")
</pallas_src>

<mosaic_0001>
module attributes {stable_mosaic.version = 11 : i64} {
  func.func @_gpse_fused_kernel(%arg0: i32, %arg1: memref<24x20xf32, #tpu.memory_space<vmem>>, %arg2: memref<856x256xf32, #tpu.memory_space<vmem>>, %arg3: memref<24x10xf32, #tpu.memory_space<vmem>>) attributes {dimension_semantics = [#tpu.dimension_semantics<arbitrary>], iteration_bounds = array<i64: 1>, scalar_prefetch = 0 : i64, scratch_operands = 0 : i64, tpu.core_type = #tpu.core_type<tc>, window_params = [{pipeline_mode = #tpu.pipeline_mode<synchronous>, transform_indices = @transform_0, window_bounds = array<i64: 24, 20>}, {pipeline_mode = #tpu.pipeline_mode<synchronous>, transform_indices = @transform_1, window_bounds = array<i64: 856, 256>}, {pipeline_mode = #tpu.pipeline_mode<synchronous>, transform_indices = @transform_2, window_bounds = array<i64: 24, 10>}]} {
    %c0 = arith.constant 0 : index
    %c0_0 = arith.constant 0 : index
    %0 = vector.load %arg2[%c0, %c0_0] : memref<856x256xf32, #tpu.memory_space<vmem>>, vector<20x64xf32>
    %c24 = arith.constant 24 : index
    %c0_1 = arith.constant 0 : index
    %1 = vector.load %arg2[%c24, %c0_1] : memref<856x256xf32, #tpu.memory_space<vmem>>, vector<1x64xf32>
    %c0_2 = arith.constant 0 : index
    %c0_3 = arith.constant 0 : index
    %2 = vector.load %arg1[%c0_2, %c0_3] : memref<24x20xf32, #tpu.memory_space<vmem>>, vector<24x20xf32>
    %cst = arith.constant dense<0.000000e+00> : vector<24x64xf32>
    %3 = tpu.matmul %2, %0, %cst {dimension_numbers = #tpu.dot_dimension_numbers<[1], [0], [0], [1], [0, 0, 1, 1], [], []>} : vector<24x20xf32>, vector<20x64xf32>, vector<24x64xf32> -> vector<24x64xf32>
    %4 = vector.broadcast %1 : vector<1x64xf32> to vector<24x64xf32>
    %5 = arith.addf %3, %4 : vector<24x64xf32>
    %cst_4 = arith.constant 0.000000e+00 : f32
    %6 = vector.broadcast %cst_4 : f32 to vector<24x64xf32>
    %7 = arith.maximumf %5, %6 : vector<24x64xf32>
    %8 = arith.mulf %7, %7 : vector<24x64xf32>
    %cst_5 = arith.constant dense<0.000000e+00> : vector<24xf32>
    %9 = vector.multi_reduction <add>, %8, %cst_5 [1] : vector<24x64xf32> to vector<24xf32>
    %10 = vector.shape_cast %9 : vector<24xf32> to vector<24x1xf32>
    %cst_6 = arith.constant 1.000000e-24 : f32
    %11 = vector.broadcast %cst_6 : f32 to vector<24x1xf32>
    %12 = arith.maximumf %10, %11 : vector<24x1xf32>
    %13 = math.rsqrt %12 : vector<24x1xf32>
    %14 = vector.broadcast %13 : vector<24x1xf32> to vector<24x64xf32>
    %15 = arith.mulf %7, %14 : vector<24x64xf32>
    %c480 = arith.constant 480 : index
    %c0_7 = arith.constant 0 : index
    %16 = vector.load %arg2[%c480, %c0_7] : memref<856x256xf32, #tpu.memory_space<vmem>>, vector<88x24xf32>
    %c568 = arith.constant 568 : index
    %c0_8 = arith.constant 0 : index
    %17 = vector.load %arg2[%c568, %c0_8] : memref<856x256xf32, #tpu.memory_space<vmem>>, vector<88x24xf32>
    %c656 = arith.constant 656 : index
    %c0_9 = arith.constant 0 : index
    %18 = vector.load %arg2[%c656, %c0_9] : memref<856x256xf32, #tpu.memory_space<vmem>>, vector<24x88xf32>
    %c32 = arith.constant 32 : index
    %c0_10 = arith.constant 0 : index
    %19 = vector.load %arg2[%c32, %c0_10] : memref<856x256xf32, #tpu.memory_space<vmem>>, vector<64x256xf32>
    %c96 = arith.constant 96 : index
    %c0_11 = arith.constant 0 : index
    %20 = vector.load %arg2[%c96, %c0_11] : memref<856x256xf32, #tpu.memory_space<vmem>>, vector<1x256xf32>
    %cst_12 = arith.constant dense<0.000000e+00> : vector<24x256xf32>
    %21 = tpu.matmul %15, %19, %cst_12 {dimension_numbers = #tpu.dot_dimension_numbers<[1], [0], [0], [1], [0, 0, 1, 1], [], []>} : vector<24x64xf32>, vector<64x256xf32>, vector<24x256xf32> -> vector<24x256xf32>
    %22 = vector.broadcast %20 : vector<1x256xf32> to vector<24x256xf32>
    %23 = arith.addf %21, %22 : vector<24x256xf32>
    %24 = vector.extract_strided_slice %23 {offsets = [0, 0], sizes = [24, 64], strides = [1, 1]} : vector<24x256xf32> to vector<24x64xf32>
    %25 = vector.extract_strided_slice %23 {offsets = [0, 64], sizes = [24, 64], strides = [1, 1]} : vector<24x256xf32> to vector<24x64xf32>
    %26 = vector.extract_strided_slice %23 {offsets = [0, 128], sizes = [24, 64], strides = [1, 1]} : vector<24x256xf32> to vector<24x64xf32>
    %27 = vector.extract_strided_slice %23 {offsets = [0, 192], sizes = [24, 64], strides = [1, 1]} : vector<24x256xf32> to vector<24x64xf32>
    %cst_13 = arith.constant dense<0.000000e+00> : vector<88x64xf32>
    %28 = tpu.matmul %17, %24, %cst_13 {dimension_numbers = #tpu.dot_dimension_numbers<[1], [0], [0], [1], [0, 0, 1, 1], [], []>} : vector<88x24xf32>, vector<24x64xf32>, vector<88x64xf32> -> vector<88x64xf32>
    %cst_14 = arith.constant dense<0.000000e+00> : vector<88x64xf32>
    %29 = tpu.matmul %16, %25, %cst_14 {dimension_numbers = #tpu.dot_dimension_numbers<[1], [0], [0], [1], [0, 0, 1, 1], [], []>} : vector<88x24xf32>, vector<24x64xf32>, vector<88x64xf32> -> vector<88x64xf32>
    %30 = arith.addf %28, %29 : vector<88x64xf32>
    %cst_15 = arith.constant dense<0.000000e+00> : vector<88x64xf32>
    %31 = tpu.matmul %16, %26, %cst_15 {dimension_numbers = #tpu.dot_dimension_numbers<[1], [0], [0], [1], [0, 0, 1, 1], [], []>} : vector<88x24xf32>, vector<24x64xf32>, vector<88x64xf32> -> vector<88x64xf32>
    %32 = arith.negf %30 : vector<88x64xf32>
    %33 = math.exp %32 : vector<88x64xf32>
    %cst_16 = arith.constant 1.000000e+00 : f32
    %34 = vector.broadcast %cst_16 : f32 to vector<88x64xf32>
    %35 = arith.addf %34, %33 : vector<88x64xf32>
    %36 = arith.divf %34, %35 : vector<88x64xf32>
    %37 = arith.mulf %36, %31 : vector<88x64xf32>
    %cst_17 = arith.constant dense<0.000000e+00> : vector<24x64xf32>
    %38 = tpu.matmul %18, %37, %cst_17 {dimension_numbers = #tpu.dot_dimension_numbers<[1], [0], [0], [1], [0, 0, 1, 1], [], []>} : vector<24x88xf32>, vector<88x64xf32>, vector<24x64xf32> -> vector<24x64xf32>
    %39 = arith.addf %38, %27 : vector<24x64xf32>
    %cst_18 = arith.constant 0.000000e+00 : f32
    %40 = vector.broadcast %cst_18 : f32 to vector<24x64xf32>
    %41 = arith.maximumf %39, %40 : vector<24x64xf32>
    %42 = arith.mulf %41, %41 : vector<24x64xf32>
    %cst_19 = arith.constant dense<0.000000e+00> : vector<24xf32>
    %43 = vector.multi_reduction <add>, %42, %cst_19 [1] : vector<24x64xf32> to vector<24xf32>
    %44 = vector.shape_cast %43 : vector<24xf32> to vector<24x1xf32>
    %cst_20 = arith.constant 1.000000e-24 : f32
    %45 = vector.broadcast %cst_20 : f32 to vector<24x1xf32>
    %46 = arith.maximumf %44, %45 : vector<24x1xf32>
    %47 = math.rsqrt %46 : vector<24x1xf32>
    %48 = vector.broadcast %47 : vector<24x1xf32> to vector<24x64xf32>
    %49 = arith.mulf %41, %48 : vector<24x64xf32>
    %50 = arith.addf %15, %49 : vector<24x64xf32>
    %c104 = arith.constant 104 : index
    %c0_21 = arith.constant 0 : index
    %51 = vector.load %arg2[%c104, %c0_21] : memref<856x256xf32, #tpu.memory_space<vmem>>, vector<64x256xf32>
    %c168 = arith.constant 168 : index
    %c0_22 = arith.constant 0 : index
    %52 = vector.load %arg2[%c168, %c0_22] : memref<856x256xf32, #tpu.memory_space<vmem>>, vector<1x256xf32>
    %cst_23 = arith.constant dense<0.000000e+00> : vector<24x256xf32>
    %53 = tpu.matmul %50, %51, %cst_23 {dimension_numbers = #tpu.dot_dimension_numbers<[1], [0], [0], [1], [0, 0, 1, 1], [], []>} : vector<24x64xf32>, vector<64x256xf32>, vector<24x256xf32> -> vector<24x256xf32>
    %54 = vector.broadcast %52 : vector<1x256xf32> to vector<24x256xf32>
    %55 = arith.addf %53, %54 : vector<24x256xf32>
    %56 = vector.extract_strided_slice %55 {offsets = [0, 0], sizes = [24, 64], strides = [1, 1]} : vector<24x256xf32> to vector<24x64xf32>
    %57 = vector.extract_strided_slice %55 {offsets = [0, 64], sizes = [24, 64], strides = [1, 1]} : vector<24x256xf32> to vector<24x64xf32>
    %58 = vector.extract_strided_slice %55 {offsets = [0, 128], sizes = [24, 64], strides = [1, 1]} : vector<24x256xf32> to vector<24x64xf32>
    %59 = vector.extract_strided_slice %55 {offsets = [0, 192], sizes = [24, 64], strides = [1, 1]} : vector<24x256xf32> to vector<24x64xf32>
    %cst_24 = arith.constant dense<0.000000e+00> : vector<88x64xf32>
    %60 = tpu.matmul %17, %56, %cst_24 {dimension_numbers = #tpu.dot_dimension_numbers<[1], [0], [0], [1], [0, 0, 1, 1], [], []>} : vector<88x24xf32>, vector<24x64xf32>, vector<88x64xf32> -> vector<88x64xf32>
    %cst_25 = arith.constant dense<0.000000e+00> : vector<88x64xf32>
    %61 = tpu.matmul %16, %57, %cst_25 {dimension_numbers = #tpu.dot_dimension_numbers<[1], [0], [0], [1], [0, 0, 1, 1], [], []>} : vector<88x24xf32>, vector<24x64xf32>, vector<88x64xf32> -> vector<88x64xf32>
    %62 = arith.addf %60, %61 : vector<88x64xf32>
    %cst_26 = arith.constant dense<0.000000e+00> : vector<88x64xf32>
    %63 = tpu.matmul %16, %58, %cst_26 {dimension_numbers = #tpu.dot_dimension_numbers<[1], [0], [0], [1], [0, 0, 1, 1], [], []>} : vector<88x24xf32>, vector<24x64xf32>, vector<88x64xf32> -> vector<88x64xf32>
    %64 = arith.negf %62 : vector<88x64xf32>
    %65 = math.exp %64 : vector<88x64xf32>
    %cst_27 = arith.constant 1.000000e+00 : f32
    %66 = vector.broadcast %cst_27 : f32 to vector<88x64xf32>
    %67 = arith.addf %66, %65 : vector<88x64xf32>
    %68 = arith.divf %66, %67 : vector<88x64xf32>
    %69 = arith.mulf %68, %63 : vector<88x64xf32>
    %cst_28 = arith.constant dense<0.000000e+00> : vector<24x64xf32>
    %70 = tpu.matmul %18, %69, %cst_28 {dimension_numbers = #tpu.dot_dimension_numbers<[1], [0], [0], [1], [0, 0, 1, 1], [], []>} : vector<24x88xf32>, vector<88x64xf32>, vector<24x64xf32> -> vector<24x64xf32>
    %71 = arith.addf %70, %59 : vector<24x64xf32>
    %cst_29 = arith.constant 0.000000e+00 : f32
    %72 = vector.broadcast %cst_29 : f32 to vector<24x64xf32>
    %73 = arith.maximumf %71, %72 : vector<24x64xf32>
    %74 = arith.mulf %73, %73 : vector<24x64xf32>
    %cst_30 = arith.constant dense<0.000000e+00> : vector<24xf32>
    %75 = vector.multi_reduction <add>, %74, %cst_30 [1] : vector<24x64xf32> to vector<24xf32>
    %76 = vector.shape_cast %75 : vector<24xf32> to vector<24x1xf32>
    %cst_31 = arith.constant 1.000000e-24 : f32
    %77 = vector.broadcast %cst_31 : f32 to vector<24x1xf32>
    %78 = arith.maximumf %76, %77 : vector<24x1xf32>
    %79 = math.rsqrt %78 : vector<24x1xf32>
    %80 = vector.broadcast %79 : vector<24x1xf32> to vector<24x64xf32>
    %81 = arith.mulf %73, %80 : vector<24x64xf32>
    %82 = arith.addf %50, %81 : vector<24x64xf32>
    %c176 = arith.constant 176 : index
    %c0_32 = arith.constant 0 : index
    %83 = vector.load %arg2[%c176, %c0_32] : memref<856x256xf32, #tpu.memory_space<vmem>>, vector<64x256xf32>
    %c240 = arith.constant 240 : index
    %c0_33 = arith.constant 0 : index
    %84 = vector.load %arg2[%c240, %c0_33] : memref<856x256xf32, #tpu.memory_space<vmem>>, vector<1x256xf32>
    %cst_34 = arith.constant dense<0.000000e+00> : vector<24x256xf32>
    %85 = tpu.matmul %82, %83, %cst_34 {dimension_numbers = #tpu.dot_dimension_numbers<[1], [0], [0], [1], [0, 0, 1, 1], [], []>} : vector<24x64xf32>, vector<64x256xf32>, vector<24x256xf32> -> vector<24x256xf32>
    %86 = vector.broadcast %84 : vector<1x256xf32> to vector<24x256xf32>
    %87 = arith.addf %85, %86 : vector<24x256xf32>
    %88 = vector.extract_strided_slice %87 {offsets = [0, 0], sizes = [24, 64], strides = [1, 1]} : vector<24x256xf32> to vector<24x64xf32>
    %89 = vector.extract_strided_slice %87 {offsets = [0, 64], sizes = [24, 64], strides = [1, 1]} : vector<24x256xf32> to vector<24x64xf32>
    %90 = vector.extract_strided_slice %87 {offsets = [0, 128], sizes = [24, 64], strides = [1, 1]} : vector<24x256xf32> to vector<24x64xf32>
    %91 = vector.extract_strided_slice %87 {offsets = [0, 192], sizes = [24, 64], strides = [1, 1]} : vector<24x256xf32> to vector<24x64xf32>
    %cst_35 = arith.constant dense<0.000000e+00> : vector<88x64xf32>
    %92 = tpu.matmul %17, %88, %cst_35 {dimension_numbers = #tpu.dot_dimension_numbers<[1], [0], [0], [1], [0, 0, 1, 1], [], []>} : vector<88x24xf32>, vector<24x64xf32>, vector<88x64xf32> -> vector<88x64xf32>
    %cst_36 = arith.constant dense<0.000000e+00> : vector<88x64xf32>
    %93 = tpu.matmul %16, %89, %cst_36 {dimension_numbers = #tpu.dot_dimension_numbers<[1], [0], [0], [1], [0, 0, 1, 1], [], []>} : vector<88x24xf32>, vector<24x64xf32>, vector<88x64xf32> -> vector<88x64xf32>
    %94 = arith.addf %92, %93 : vector<88x64xf32>
    %cst_37 = arith.constant dense<0.000000e+00> : vector<88x64xf32>
    %95 = tpu.matmul %16, %90, %cst_37 {dimension_numbers = #tpu.dot_dimension_numbers<[1], [0], [0], [1], [0, 0, 1, 1], [], []>} : vector<88x24xf32>, vector<24x64xf32>, vector<88x64xf32> -> vector<88x64xf32>
    %96 = arith.negf %94 : vector<88x64xf32>
    %97 = math.exp %96 : vector<88x64xf32>
    %cst_38 = arith.constant 1.000000e+00 : f32
    %98 = vector.broadcast %cst_38 : f32 to vector<88x64xf32>
    %99 = arith.addf %98, %97 : vector<88x64xf32>
    %100 = arith.divf %98, %99 : vector<88x64xf32>
    %101 = arith.mulf %100, %95 : vector<88x64xf32>
    %cst_39 = arith.constant dense<0.000000e+00> : vector<24x64xf32>
    %102 = tpu.matmul %18, %101, %cst_39 {dimension_numbers = #tpu.dot_dimension_numbers<[1], [0], [0], [1], [0, 0, 1, 1], [], []>} : vector<24x88xf32>, vector<88x64xf32>, vector<24x64xf32> -> vector<24x64xf32>
    %103 = arith.addf %102, %91 : vector<24x64xf32>
    %cst_40 = arith.constant 0.000000e+00 : f32
    %104 = vector.broadcast %cst_40 : f32 to vector<24x64xf32>
    %105 = arith.maximumf %103, %104 : vector<24x64xf32>
    %106 = arith.mulf %105, %105 : vector<24x64xf32>
    %cst_41 = arith.constant dense<0.000000e+00> : vector<24xf32>
    %107 = vector.multi_reduction <add>, %106, %cst_41 [1] : vector<24x64xf32> to vector<24xf32>
    %108 = vector.shape_cast %107 : vector<24xf32> to vector<24x1xf32>
    %cst_42 = arith.constant 1.000000e-24 : f32
    %109 = vector.broadcast %cst_42 : f32 to vector<24x1xf32>
    %110 = arith.maximumf %108, %109 : vector<24x1xf32>
    %111 = math.rsqrt %110 : vector<24x1xf32>
    %112 = vector.broadcast %111 : vector<24x1xf32> to vector<24x64xf32>
    %113 = arith.mulf %105, %112 : vector<24x64xf32>
    %114 = arith.addf %82, %113 : vector<24x64xf32>
    %115 = arith.mulf %114, %114 : vector<24x64xf32>
    %cst_43 = arith.constant dense<0.000000e+00> : vector<24xf32>
    %116 = vector.multi_reduction <add>, %115, %cst_43 [1] : vector<24x64xf32> to vector<24xf32>
    %117 = vector.shape_cast %116 : vector<24xf32> to vector<24x1xf32>
    %cst_44 = arith.constant 1.000000e-24 : f32
    %118 = vector.broadcast %cst_44 : f32 to vector<24x1xf32>
    %119 = arith.maximumf %117, %118 : vector<24x1xf32>
    %120 = math.rsqrt %119 : vector<24x1xf32>
    %121 = vector.broadcast %120 : vector<24x1xf32> to vector<24x64xf32>
    %122 = arith.mulf %114, %121 : vector<24x64xf32>
    %c248 = arith.constant 248 : index
    %c0_45 = arith.constant 0 : index
    %123 = vector.load %arg2[%c248, %c0_45] : memref<856x256xf32, #tpu.memory_space<vmem>>, vector<64x96xf32>
    %c312 = arith.constant 312 : index
    %c0_46 = arith.constant 0 : index
    %124 = vector.load %arg2[%c312, %c0_46] : memref<856x256xf32, #tpu.memory_space<vmem>>, vector<1x96xf32>
    %c320 = arith.constant 320 : index
    %c0_47 = arith.constant 0 : index
    %125 = vector.load %arg2[%c320, %c0_47] : memref<856x256xf32, #tpu.memory_space<vmem>>, vector<1x96xf32>
    %c328 = arith.constant 328 : index
    %c0_48 = arith.constant 0 : index
    %126 = vector.load %arg2[%c328, %c0_48] : memref<856x256xf32, #tpu.memory_space<vmem>>, vector<1x6xf32>
    %c688 = arith.constant 688 : index
    %c0_49 = arith.constant 0 : index
    %127 = vector.load %arg2[%c688, %c0_49] : memref<856x256xf32, #tpu.memory_space<vmem>>, vector<96x6xf32>
    %c784 = arith.constant 784 : index
    %c0_50 = arith.constant 0 : index
    %128 = vector.load %arg2[%c784, %c0_50] : memref<856x256xf32, #tpu.memory_space<vmem>>, vector<6x96xf32>
    %cst_51 = arith.constant dense<0.000000e+00> : vector<24x96xf32>
    %129 = tpu.matmul %122, %123, %cst_51 {dimension_numbers = #tpu.dot_dimension_numbers<[1], [0], [0], [1], [0, 0, 1, 1], [], []>} : vector<24x64xf32>, vector<64x96xf32>, vector<24x96xf32> -> vector<24x96xf32>
    %130 = vector.broadcast %124 : vector<1x96xf32> to vector<24x96xf32>
    %131 = arith.addf %129, %130 : vector<24x96xf32>
    %cst_52 = arith.constant 0.000000e+00 : f32
    %132 = vector.broadcast %cst_52 : f32 to vector<24x96xf32>
    %133 = arith.maximumf %131, %132 : vector<24x96xf32>
    %134 = arith.mulf %133, %133 : vector<24x96xf32>
    %cst_53 = arith.constant dense<0.000000e+00> : vector<24x6xf32>
    %135 = tpu.matmul %134, %127, %cst_53 {dimension_numbers = #tpu.dot_dimension_numbers<[1], [0], [0], [1], [0, 0, 1, 1], [], []>} : vector<24x96xf32>, vector<96x6xf32>, vector<24x6xf32> -> vector<24x6xf32>
    %cst_54 = arith.constant 1.000000e-24 : f32
    %136 = vector.broadcast %cst_54 : f32 to vector<24x6xf32>
    %137 = arith.maximumf %135, %136 : vector<24x6xf32>
    %138 = math.rsqrt %137 : vector<24x6xf32>
    %cst_55 = arith.constant dense<0.000000e+00> : vector<24x96xf32>
    %139 = tpu.matmul %138, %128, %cst_55 {dimension_numbers = #tpu.dot_dimension_numbers<[1], [0], [0], [1], [0, 0, 1, 1], [], []>} : vector<24x6xf32>, vector<6x96xf32>, vector<24x96xf32> -> vector<24x96xf32>
    %140 = arith.mulf %133, %139 : vector<24x96xf32>
    %141 = vector.broadcast %125 : vector<1x96xf32> to vector<24x96xf32>
    %142 = arith.mulf %140, %141 : vector<24x96xf32>
    %cst_56 = arith.constant dense<0.000000e+00> : vector<24x6xf32>
    %143 = tpu.matmul %142, %127, %cst_56 {dimension_numbers = #tpu.dot_dimension_numbers<[1], [0], [0], [1], [0, 0, 1, 1], [], []>} : vector<24x96xf32>, vector<96x6xf32>, vector<24x6xf32> -> vector<24x6xf32>
    %144 = vector.broadcast %126 : vector<1x6xf32> to vector<24x6xf32>
    %145 = arith.addf %143, %144 : vector<24x6xf32>
    %c680 = arith.constant 680 : index
    %c0_57 = arith.constant 0 : index
    %146 = vector.load %arg2[%c680, %c0_57] : memref<856x256xf32, #tpu.memory_space<vmem>>, vector<3x24xf32>
    %c336 = arith.constant 336 : index
    %c0_58 = arith.constant 0 : index
    %147 = vector.load %arg2[%c336, %c0_58] : memref<856x256xf32, #tpu.memory_space<vmem>>, vector<64x64xf32>
    %c400 = arith.constant 400 : index
    %c0_59 = arith.constant 0 : index
    %148 = vector.load %arg2[%c400, %c0_59] : memref<856x256xf32, #tpu.memory_space<vmem>>, vector<1x64xf32>
    %c408 = arith.constant 408 : index
    %c0_60 = arith.constant 0 : index
    %149 = vector.load %arg2[%c408, %c0_60] : memref<856x256xf32, #tpu.memory_space<vmem>>, vector<64x4xf32>
    %c472 = arith.constant 472 : index
    %c0_61 = arith.constant 0 : index
    %150 = vector.load %arg2[%c472, %c0_61] : memref<856x256xf32, #tpu.memory_space<vmem>>, vector<1x4xf32>
    %cst_62 = arith.constant dense<0.000000e+00> : vector<3x64xf32>
    %151 = tpu.matmul %146, %122, %cst_62 {dimension_numbers = #tpu.dot_dimension_numbers<[1], [0], [0], [1], [0, 0, 1, 1], [], []>} : vector<3x24xf32>, vector<24x64xf32>, vector<3x64xf32> -> vector<3x64xf32>
    %cst_63 = arith.constant dense<0.000000e+00> : vector<3x64xf32>
    %152 = tpu.matmul %151, %147, %cst_63 {dimension_numbers = #tpu.dot_dimension_numbers<[1], [0], [0], [1], [0, 0, 1, 1], [], []>} : vector<3x64xf32>, vector<64x64xf32>, vector<3x64xf32> -> vector<3x64xf32>
    %153 = vector.broadcast %148 : vector<1x64xf32> to vector<3x64xf32>
    %154 = arith.addf %152, %153 : vector<3x64xf32>
    %cst_64 = arith.constant 0.000000e+00 : f32
    %155 = vector.broadcast %cst_64 : f32 to vector<3x64xf32>
    %156 = arith.maximumf %154, %155 : vector<3x64xf32>
    %157 = arith.mulf %156, %156 : vector<3x64xf32>
    %cst_65 = arith.constant dense<0.000000e+00> : vector<3xf32>
    %158 = vector.multi_reduction <add>, %157, %cst_65 [1] : vector<3x64xf32> to vector<3xf32>
    %159 = vector.shape_cast %158 : vector<3xf32> to vector<3x1xf32>
    %cst_66 = arith.constant 1.000000e-24 : f32
    %160 = vector.broadcast %cst_66 : f32 to vector<3x1xf32>
    %161 = arith.maximumf %159, %160 : vector<3x1xf32>
    %162 = math.rsqrt %161 : vector<3x1xf32>
    %163 = vector.broadcast %162 : vector<3x1xf32> to vector<3x64xf32>
    %164 = arith.mulf %156, %163 : vector<3x64xf32>
    %cst_67 = arith.constant dense<0.000000e+00> : vector<3x4xf32>
    %165 = tpu.matmul %164, %149, %cst_67 {dimension_numbers = #tpu.dot_dimension_numbers<[1], [0], [0], [1], [0, 0, 1, 1], [], []>} : vector<3x64xf32>, vector<64x4xf32>, vector<3x4xf32> -> vector<3x4xf32>
    %166 = vector.broadcast %150 : vector<1x4xf32> to vector<3x4xf32>
    %167 = arith.addf %165, %166 : vector<3x4xf32>
    %c792 = arith.constant 792 : index
    %c0_68 = arith.constant 0 : index
    %168 = vector.load %arg2[%c792, %c0_68] : memref<856x256xf32, #tpu.memory_space<vmem>>, vector<24x24xf32>
    %c816 = arith.constant 816 : index
    %c0_69 = arith.constant 0 : index
    %169 = vector.load %arg2[%c816, %c0_69] : memref<856x256xf32, #tpu.memory_space<vmem>>, vector<24x3xf32>
    %c840 = arith.constant 840 : index
    %c0_70 = arith.constant 0 : index
    %170 = vector.load %arg2[%c840, %c0_70] : memref<856x256xf32, #tpu.memory_space<vmem>>, vector<6x10xf32>
    %c848 = arith.constant 848 : index
    %c0_71 = arith.constant 0 : index
    %171 = vector.load %arg2[%c848, %c0_71] : memref<856x256xf32, #tpu.memory_space<vmem>>, vector<4x10xf32>
    %cst_72 = arith.constant dense<0.000000e+00> : vector<24x6xf32>
    %172 = tpu.matmul %168, %145, %cst_72 {dimension_numbers = #tpu.dot_dimension_numbers<[1], [0], [0], [1], [0, 0, 1, 1], [], []>} : vector<24x24xf32>, vector<24x6xf32>, vector<24x6xf32> -> vector<24x6xf32>
    %cst_73 = arith.constant dense<0.000000e+00> : vector<24x10xf32>
    %173 = tpu.matmul %172, %170, %cst_73 {dimension_numbers = #tpu.dot_dimension_numbers<[1], [0], [0], [1], [0, 0, 1, 1], [], []>} : vector<24x6xf32>, vector<6x10xf32>, vector<24x10xf32> -> vector<24x10xf32>
    %cst_74 = arith.constant dense<0.000000e+00> : vector<24x4xf32>
    %174 = tpu.matmul %169, %167, %cst_74 {dimension_numbers = #tpu.dot_dimension_numbers<[1], [0], [0], [1], [0, 0, 1, 1], [], []>} : vector<24x3xf32>, vector<3x4xf32>, vector<24x4xf32> -> vector<24x4xf32>
    %cst_75 = arith.constant dense<0.000000e+00> : vector<24x10xf32>
    %175 = tpu.matmul %174, %171, %cst_75 {dimension_numbers = #tpu.dot_dimension_numbers<[1], [0], [0], [1], [0, 0, 1, 1], [], []>} : vector<24x4xf32>, vector<4x10xf32>, vector<24x10xf32> -> vector<24x10xf32>
    %176 = arith.addf %173, %175 : vector<24x10xf32>
    %c0_76 = arith.constant 0 : index
    %c0_77 = arith.constant 0 : index
    %177 = vector.load %arg3[%c0_76, %c0_77] : memref<24x10xf32, #tpu.memory_space<vmem>>, vector<24x10xf32>
    tpu.vector_store %arg3[%c0_76, %c0_77], %176 {strides = array<i32>} : memref<24x10xf32, #tpu.memory_space<vmem>>, vector<24x10xf32>,
    return
  }
  func.func @transform_0(%arg0: i32) -> (i32, i32) {
    %c0_i32 = arith.constant 0 : i32
    %c0_i32_0 = arith.constant 0 : i32
    %c0_i32_1 = arith.constant 0 : i32
    return %c0_i32, %c0_i32_0 : i32, i32
  }
  func.func @transform_1(%arg0: i32) -> (i32, i32) {
    %c0_i32 = arith.constant 0 : i32
    %c0_i32_0 = arith.constant 0 : i32
    %c0_i32_1 = arith.constant 0 : i32
    return %c0_i32, %c0_i32_0 : i32, i32
  }
  func.func @transform_2(%arg0: i32) -> (i32, i32) {
    %c0_i32 = arith.constant 0 : i32
    %c0_i32_0 = arith.constant 0 : i32
    %c0_i32_1 = arith.constant 0 : i32
    return %c0_i32, %c0_i32_0 : i32, i32
  }
}

</mosaic_0001>

<bundles_post_ra>
// kernel: tpu_custom_call.1
= control target key start
LH: loop header
LB: loop body
LE: loop exit
PB: predicated region body
PF: predicated region fallthrough
CT: control target
= control target key end

     0   :  { %7 = vsyncpa [#allocation3], 0  ;;  %s5951_s0 = inlined_call_operand.hbm [shape: f32[24,20], index: 0, kind: input, shape index: {}]   ;;  %s5952_s1 = inlined_call_operand.hbm [shape: f32[856,256], index: 1, kind: input, shape index: {}]   ;;  %s5953_s2 = inlined_call_operand.vmem [shape: f32[24,10], index: 2, kind: output, shape index: {}]  }
   0x1   :  { %8 = vsyncpa [#allocation5], 0  ;;  %s5033_s9 = smov [#allocation2]   ;;  %s4985_s13 = scalar_lea.hbm %s5951_s0, 384 }
   0x2   :  { %s14_s10 = sshll.u32 %s5033_s9, 4  ;;  %p4986_p0 = scmp.ne.s32.totalorder %s5951_s0, %s4985_s13  ;;  %s15_s10 = int_to_ptr.vmem [resolvable:$true] %s14_s10 }
   0x3   :  { %p4989_p1 = scmp.lt.u32.totalorder %s4985_s13, %s5951_s0 }
   0x5   :  { %p4991_p2 = pnand %p4989_p1, %p4986_p0 }
   0x7   :  { %4994 = shalt.err (!%p4991_p2)
}
   0x8   :  { %s4995_s18 = scalar_lea.vmem %s15_s10, 384  ;;  %p5000_p4 = scmp.lt.s32.totalorder %s15_s10, %s15_s10 }
   0x9   :  { %p4996_p3 = scmp.ne.s32.totalorder %s15_s10, %s4995_s18  ;;  %p5001_p5 = scmp.lt.s32.totalorder %s4995_s18, %s4995_s18 }
   0xb   :  { %p5002_p6 = por %p5001_p5, %p5000_p4 }
   0xd   :  { %p5003_p7 = pnand %p5002_p6, %p4996_p3 }
   0xf   :  { %5006 = shalt.err (!%p5003_p7)
}
  0x10   :  { %s5034_s19 = smov 128   ;;  %s5035_s20 = smov 8  }
  0x11   :  { %20 = dma.hbm_to_vmem [thread:$0]  %s5951_s0, 384, %s15_s10, [#allocation3], %s5034_s19, %s5034_s19, %s5035_s20  }
  0x12   :  { %s5036_s23 = smov [#allocation4]   ;;  %s5007_s27 = scalar_lea.hbm %s5952_s1, 27392 }
  0x13   :  { %s26_s24 = sshll.u32 %s5036_s23, 4  ;;  %p5008_p8 = scmp.ne.s32.totalorder %s5952_s1, %s5007_s27  ;;  %s27_s24 = int_to_ptr.vmem [resolvable:$true] %s26_s24 }
  0x14   :  { %p5011_p9 = scmp.lt.u32.totalorder %s5007_s27, %s5952_s1 }
  0x16   :  { %p5013_p10 = pnand %p5011_p9, %p5008_p8 }
  0x18   :  { %5016 = shalt.err (!%p5013_p10)
}
  0x19   :  { %s5017_s4 = scalar_lea.vmem %s27_s24, 27392  ;;  %p5022_p12 = scmp.lt.s32.totalorder %s27_s24, %s27_s24 }
  0x1a   :  { %p5018_p11 = scmp.ne.s32.totalorder %s27_s24, %s5017_s4  ;;  %p5023_p13 = scmp.lt.s32.totalorder %s5017_s4, %s5017_s4 }
  0x1c   :  { %p5024_p0 = por %p5023_p13, %p5022_p12 }
  0x1e   :  { %p5025_p1 = pnand %p5024_p0, %p5018_p11 }
  0x20   :  { %5028 = shalt.err (!%p5025_p1)
}
  0x21   :  { %s5037_s0 = smov 256   ;;  %s5038_s5 = smov 16  }
  0x22   :  { %32 = dma.hbm_to_vmem [thread:$0]  %s5952_s1, 27392, %s27_s24, [#allocation5], %s5037_s0, %s5037_s0, %s5038_s5  }
  0x23   :  { %5029 = dma.done.wait [#allocation3], 384  }
  0x24   :  { %5030 = vsyncadd [#allocation3], 4294966912 }
  0x25   :  { %5031 = dma.done.wait [#allocation5], 27392  }
  0x26   :  { %5032 = vsyncadd [#allocation5], 4294939904  ;;  %v5039_v0 = vmov 0.0|0.0   ;;  %vm5040_vm0 = vmmov 0   ;;  %v5041_v1 = vmov 0.0   ;;  %v39_v2 = vld [vmem:[#allocation4] sm:$0xff] }
  0x27   :  { %4492 = vmatprep.subr.bf16.mxu1 %v5039_v0  ;;  %3842 = vmatprep.mubr.msk.f32.mxu1 %vm5040_vm0, %v5041_v1  ;;  %v40_v3 = vld [vmem:[#allocation4 + $0x10] sm:$0xff]  ;;  %v41_v5 = vld [vmem:[#allocation4 + $0x20] sm:$0xf]  ;;  %vm56_vm1 = vcmask 1043456   ;;  %v43_v6 = vld [vmem:[#allocation2] sm:$0xff]  ;;  %vm46_vm2 = vcmask 162816  }
  0x28   :  { %4511 = vmatprep.subr.bf16.mxu0 %v5039_v0  ;;  %3857 = vmatprep.mubr.msk.f32.mxu0 %vm5040_vm0, %v5041_v1  ;;  %v4493_v4 = vpack.c.bf16 %v40_v3, %v39_v2  ;;  %v44_v7 = vld [vmem:[#allocation2 + $0x8] sm:$0xff]  ;;  %v45_v8 = vld [vmem:[#allocation2 + $0x10] sm:$0xff]  ;;  %v191_v9 = vld [vmem:[#allocation4 + $0x48] sm:$0xff]  ;;  %vm146_vm3 = vcmask 523264   ;;  %v209_v2 = vlaneseq  ;;  %s5042_s1 = smov 64   ;;  %vm323_vm4 = vcmask 195584  }
  0x29   :  { %v193_v10 = vld [vmem:[#allocation4 + $0x58] sm:$0xff]  ;;  %v42_v12 = vld [vmem:[#allocation4 + $0x30] ss:$0 sm:$0xff]  ;;  %v190_v31 = vld [vmem:[#allocation4 + $0x40] sm:$0xff]  ;;  %vm839_vm5 = vcmask 719872   ;;  %vm2474_vm6 = vcmask 785408  }
  0x2a   :  { %4494 = vmatpush3.bf16.msra.mxu1 %v4493_v4  ;;  %v4495_v11 = vpack.c.bf16 %v193_v10, %v191_v9  ;;  %v192_v32 = vld [vmem:[#allocation4 + $0x50] sm:$0xff]  ;;  %v195_v34 = vld [vmem:[#allocation4 + $0x68] sm:$0xff]  ;;  %v197_v35 = vld [vmem:[#allocation4 + $0x78] sm:$0xff]  ;;  %v210_v3 = vshrl.u32 %v209_v2, 7  ;;  %vm2580_vm7 = vcmask 1045504   ;;  %vm2570_vm8 = vcmask 48128  }
  0x2b   :  { %3840 = vmatprep.subr.mxu1 %v5041_v1  ;;  %v4497_v33 = vpack.c.bf16 %v192_v32, %v190_v31  ;;  %v4499_v36 = vpack.c.bf16 %v197_v35, %v195_v34  ;;  %v194_v37 = vld [vmem:[#allocation4 + $0x60] sm:$0xff]  ;;  %v196_v38 = vld [vmem:[#allocation4 + $0x70] sm:$0xff]  ;;  %v199_v40 = vld [vmem:[#allocation4 + $0x88] sm:$0xff]  ;;  %vm2926_vm9 = vcmask 518144   ;;  %vm3113_vm10 = vcmask 1042432  }
  0x2c   :  { %v4501_v39 = vpack.c.bf16 %v196_v38, %v194_v37  ;;  %v201_v41 = vld [vmem:[#allocation4 + $0x98] sm:$0xff]  ;;  %v198_v43 = vld [vmem:[#allocation4 + $0x80] sm:$0xff]  ;;  %v200_v44 = vld [vmem:[#allocation4 + $0x90] sm:$0xff]  ;;  %v5115_v4 = vsub.s32 0, %v210_v3  ;;  %vm3103_vm11 = vcmask 23552   ;;  %vm3197_vm12 = vcmask 31744  }
  0x2d   :  { %v4503_v42 = vpack.c.bf16 %v201_v41, %v199_v40  ;;  %v4505_v45 = vpack.c.bf16 %v200_v44, %v198_v43  ;;  %v203_v46 = vld [vmem:[#allocation4 + $0xa8] sm:$0xff]  ;;  %v205_v47 = vld [vmem:[#allocation4 + $0xb8] sm:$0xff]  ;;  %v202_v49 = vld [vmem:[#allocation4 + $0xa0] sm:$0xff]  ;;  %vm3382_vm13 = vcmask 80896  }
  0x2e   :  { %3841 = vmatpush3.msk.msra.mxu1 %vm56_vm1, %v41_v5  ;;  %v4507_v48 = vpack.c.bf16 %v205_v47, %v203_v46  ;;  %v204_v50 = vld [vmem:[#allocation4 + $0xb0] sm:$0xff]  ;;  %v207_v5 = vld [vmem:[#allocation4 + $0xc0] ss:$8 sm:$0x3] }
  0x2f   :  { %3843 = vmatmul.mubr.msk.f32.vlgmr.msra.gmra.mrb[0].mxu1 %vm46_vm2, %v43_v6  ;;  %4496 = vmatprep.subr.bf16.mxu1 %v4495_v11  ;;  %v4509_v51 = vpack.c.bf16 %v204_v50, %v202_v49  ;;  %v5117_v6 = vsub.s32 1, %v210_v3  ;;  %v5178_v31 = vld [vmem:[#allocation4 + $0x430] sm:$0xff]  ;;  %v5184_v32 = vld [vmem:[#allocation4 + $0x440] sm:$0xff] }
  0x30   :  { %3845 = vmatprep.mubr.msk.f32.mxu1 %vm5040_vm0, %v5041_v1  ;;  %4498 = vmatpush1.bf16.msra.mxu1 %v4497_v33  ;;  %v5190_v33 = vld [vmem:[#allocation4 + $0x450] sm:$0xff]  ;;  %v5196_v34 = vld [vmem:[#allocation4 + $0x460] sm:$0xff] }
  0x31   :  { %4500 = vmatprep.subr.bf16.mxu1 %v4499_v36  ;;  %v216_v10 = vrot.slane %v207_v5, %v5117_v6  ;;  %v5250_v40 = vld [vmem:[#allocation4 + $0x470] sm:$0xff]  ;;  %v5256_v41 = vld [vmem:[#allocation4 + $0x480] sm:$0xff] }
  0x32   :  { %v5268_v43 = vld [vmem:[#allocation4 + $0x4a0] sm:$0xff]  ;;  %v5274_v44 = vld [vmem:[#allocation4 + $0x4b0] sm:$0xff] }
  0x33   :  { %3846 = vmatmul.mubr.msk.f32.gmra.mrb[2].mxu1 %vm46_vm2, %v44_v7  ;;  %v5286_v46 = vld [vmem:[#allocation4 + $0x4d0] sm:$0xff]  ;;  %v5292_v47 = vld [vmem:[#allocation4 + $0x4e0] sm:$0xff] }
  0x34   :  { %3848 = vmatprep.mubr.msk.f32.mxu1 %vm5040_vm0, %v5041_v1  ;;  %4502 = vmatpush1.bf16.msra.mxu1 %v4501_v39  ;;  %v5304_v49 = vld [vmem:[#allocation4 + $0x500] sm:$0xff]  ;;  %v5310_v50 = vld [vmem:[#allocation4 + $0x510] sm:$0xff] }
  0x35   :  { %4504 = vmatprep.subr.bf16.mxu1 %v4503_v42  ;;  %v5262_v42 = vld [vmem:[#allocation4 + $0x490] sm:$0xff] }
  0x37   :  { %3849 = vmatmul.mubr.msk.f32.gmra.mrb[4].mxu1 %vm46_vm2, %v45_v8  ;;  %v212_v8 = vrot.slane %v207_v5, %v5115_v4 }
  0x38   :  { %292 = vmatprep.mubr.f32.mxu1 %v5041_v1  ;;  %4506 = vmatpush1.bf16.msra.mxu1 %v4505_v45  ;;  %v5280_v45 = vld [vmem:[#allocation4 + $0x4c0] sm:$0xff] }
  0x39   :  { %4508 = vmatprep.subr.bf16.mxu1 %v4507_v48  ;;  %v5298_v48 = vld [vmem:[#allocation4 + $0x4f0] sm:$0xff] }
  0x3c   :  { %4510 = vmatpush1.bf16.msra.mxu1 %v4509_v51 }
  0x3d   :  { %4517 = vmatprep.subr.bf16.mxu1 %v5039_v0 }
 0x102   :  { %v126_v13 = vpop.f32.mrb[0].mxu1 }
 0x103   :  { %v127_v14 = vadd.f32 %v126_v13, %v42_v12  ;;  %v3844_v15 = vpop.f32.mrb[1].mxu1 }
 0x105   :  { %v140_v16 = vmax.f32 %v127_v14, 0.0 }
 0x106   :  { %v131_v17 = vpop.f32.mrb[2].mxu1 }
 0x107   :  { %v132_v18 = vadd.f32 %v131_v17, %v42_v12  ;;  %v3847_v19 = vpop.f32.mrb[3].mxu1  ;;  %v143_v20 = vmul.f32 %v140_v16, %v140_v16 }
 0x109   :  { %v141_v21 = vmax.f32 %v132_v18, 0.0  ;;  %v147_v22 = vsel %vm146_vm3, %v143_v20, 0.0 }
 0x10a   :  { %148 = vadd.xlane.f32.xlu0 %v147_v22  ;;  %v136_v23 = vpop.f32.mrb[4].mxu1 }
 0x10b   :  { %v137_v24 = vadd.f32 %v136_v23, %v42_v12  ;;  %v144_v25 = vmul.f32 %v141_v21, %v141_v21  ;;  %v3850_v26 = vpop.f32.mrb[5].mxu1 }
 0x10c   :  { %v5148_v26 = vld [vmem:[#allocation4 + $0x3e0] sm:$0xff] }
 0x10d   :  { %v142_v27 = vmax.f32 %v137_v24, 0.0  ;;  %v150_v28 = vsel %vm146_vm3, %v144_v25, 0.0  ;;  %v5133_v24 = vld [vmem:[#allocation4 + $0x3c0] sm:$0xff]  ;;  %v5141_v25 = vld [vmem:[#allocation4 + $0x3d0] sm:$0xff] }
 0x10e   :  { %151 = vadd.xlane.f32.xlu0 %v150_v28  ;;  %v5160_v28 = vld [vmem:[#allocation4 + $0x400] sm:$0xff] }
 0x10f   :  { %v145_v29 = vmul.f32 %v142_v27, %v142_v27 }
 0x111   :  { %v153_v30 = vsel %vm146_vm3, %v145_v29, 0.0  ;;  %v5166_v29 = vld [vmem:[#allocation4 + $0x410] sm:$0xff] }
 0x112   :  { %154 = vadd.xlane.f32.xlu1 %v153_v30  ;;  %v5172_v30 = vld [vmem:[#allocation4 + $0x420] sm:$0xff] }
 0x197   :  { %v149_v52 = vpop.xlane.xlu0 %148 }
 0x198   :  { %v156_v53 = vmax.f32 %v149_v52, 1e-24 }
 0x19a   :  { %4790 = vrsqrt.f32 %v156_v53 }
 0x19b   :  { %v152_v54 = vpop.xlane.xlu0 %151 }
 0x19c   :  { %v157_v55 = vmax.f32 %v152_v54, 1e-24 }
 0x19e   :  { %4792 = vrsqrt.f32 %v157_v55 }
 0x19f   :  { %v155_v56 = vpop.xlane.xlu1 %154 }
 0x1a0   :  { %v158_v57 = vmax.f32 %v155_v56, 1e-24 }
 0x1a2   :  { %4794 = vrsqrt.f32 %v158_v57 }
 0x1a4   :  { %v4791_v58 = vpop.eup %4790 }
 0x1a5   :  { %v5099_v59 = vmul.f32 %v4791_v58, %v140_v16 }
 0x1a7   :  { %3396 = vmatmul.mubr.msk.f32.vlgmr.msra.gmra.mrb[6].mxu1 %vm146_vm3, %v5099_v59 }
 0x1a8   :  { %v4793_v60 = vpop.eup %4792  ;;  %298 = vmatprep.mubr.f32.mxu1 %v5041_v1 }
 0x1a9   :  { %v5104_v61 = vmul.f32 %v4793_v60, %v141_v21 }
 0x1ab   :  { %3397 = vmatmul.mubr.msk.f32.gmra.mrb[8].mxu1 %vm146_vm3, %v5104_v61 }
 0x1ac   :  { %v4795_v62 = vpop.eup %4794  ;;  %304 = vmatprep.mubr.f32.mxu1 %v5041_v1 }
 0x1ad   :  { %v5109_v63 = vmul.f32 %v4795_v62, %v142_v27  ;;  %v5154_v27 = vld [vmem:[#allocation4 + $0x3f0] sm:$0xff] }
 0x1af   :  { %3398 = vmatmul.mubr.msk.f32.gmra.mrb[10].mxu1 %vm146_vm3, %v5109_v63 }
 0x1b0   :  { %3935 = vmatprep.mubr.msk.f32.mxu1 %vm5040_vm0, %v5041_v1 }
 0x27a   :  { %v294_v7 = vpop.f32.mrb[6].mxu1 }
 0x27b   :  { %v296_v9 = vpop.f32.mrb[7].mxu1  ;;  %v5121_v12 = vadd.f32 %v294_v7, %v212_v8 }
 0x27c   :  { %v297_v15 = vadd.f32 %v296_v9, %v216_v10 }
 0x27e   :  { %v300_v11 = vpop.f32.mrb[8].mxu1 }
 0x27f   :  { %v5123_v13 = vadd.f32 %v300_v11, %v212_v8  ;;  %v302_v14 = vpop.f32.mrb[9].mxu1 }
 0x280   :  { %v303_v16 = vadd.f32 %v302_v14, %v216_v10 }
 0x281   :  { %v4775_v17 = vpack.i.bf16 %v5123_v13, %v5121_v12  ;;  %v4515_v18 = vpack.c.bf16 %v5123_v13, %v5121_v12 }
 0x282   :  { %v4518_v19 = vpack.c.bf16 %v303_v16, %v297_v15  ;;  %v306_v20 = vpop.f32.mrb[10].mxu1 }
 0x283   :  { %v307_v21 = vadd.f32 %v306_v20, %v212_v8  ;;  %v308_v22 = vpop.f32.mrb[11].mxu1  ;;  %4776 = vrot.lane.b32.xlu1 %v4775_v17, %s5042_s1 }
 0x284   :  { %4519 = vmatpush3.bf16.msra.mxu1 %v4518_v19  ;;  %v309_v23 = vadd.f32 %v308_v22, %v216_v10 }
 0x285   :  { %318 = vrot.lane.b32.xlu0 %v307_v21, %s5042_s1  ;;  %3933 = vmatprep.subr.mxu1 %v5041_v1 }
 0x287   :  { %830 = vrot.lane.b32.xlu1 %v297_v15, %s5042_s1 }
 0x288   :  { %3934 = vmatpush3.msra.mxu1 %v309_v23 }
 0x289   :  { %3936 = vmatmul.mubr.msk.f32.vlgmr.msra.gmra.mrb[12].mxu1 %vm323_vm4, %v5133_v24  ;;  %4520 = vmatprep.subr.bf16.mxu1 %v5039_v0 }
 0x28a   :  { %3938 = vmatprep.mubr.msk.f32.mxu1 %vm5040_vm0, %v5041_v1 }
 0x28b   :  { %832 = vrot.lane.b32.xlu1 %v303_v16, %s5042_s1 }
 0x28d   :  { %3939 = vmatmul.mubr.msk.f32.gmra.mrb[14].mxu1 %vm323_vm4, %v5141_v25 }
 0x28e   :  { %3941 = vmatprep.mubr.msk.f32.mxu1 %vm5040_vm0, %v5041_v1 }
 0x28f   :  { %834 = vrot.lane.b32.xlu1 %v309_v23, %s5042_s1 }
 0x291   :  { %3942 = vmatmul.mubr.msk.f32.gmra.mrb[16].mxu1 %vm323_vm4, %v5148_v26 }
 0x292   :  { %3944 = vmatprep.mubr.msk.f32.mxu1 %vm5040_vm0, %v5041_v1 }
 0x295   :  { %3945 = vmatmul.mubr.msk.f32.gmra.mrb[18].mxu1 %vm323_vm4, %v5154_v27 }
 0x296   :  { %3947 = vmatprep.mubr.msk.f32.mxu1 %vm5040_vm0, %v5041_v1 }
 0x299   :  { %3948 = vmatmul.mubr.msk.f32.gmra.mrb[20].mxu1 %vm323_vm4, %v5160_v28 }
 0x29a   :  { %3950 = vmatprep.mubr.msk.f32.mxu1 %vm5040_vm0, %v5041_v1 }
 0x29d   :  { %3951 = vmatmul.mubr.msk.f32.gmra.mrb[22].mxu1 %vm323_vm4, %v5166_v29 }
 0x29e   :  { %3953 = vmatprep.mubr.msk.f32.mxu1 %vm5040_vm0, %v5041_v1 }
 0x2a1   :  { %3954 = vmatmul.mubr.msk.f32.gmra.mrb[24].mxu1 %vm323_vm4, %v5172_v30 }
 0x2a2   :  { %3956 = vmatprep.mubr.msk.f32.mxu1 %vm5040_vm0, %v5041_v1 }
 0x2a5   :  { %3957 = vmatmul.mubr.msk.f32.gmra.mrb[26].mxu1 %vm323_vm4, %v5178_v31 }
 0x2a6   :  { %3959 = vmatprep.mubr.msk.f32.mxu1 %vm5040_vm0, %v5041_v1 }
 0x2a9   :  { %3960 = vmatmul.mubr.msk.f32.gmra.mrb[28].mxu1 %vm323_vm4, %v5184_v32 }
 0x2aa   :  { %3962 = vmatprep.mubr.msk.f32.mxu1 %vm5040_vm0, %v5041_v1 }
 0x2ad   :  { %3963 = vmatmul.mubr.msk.f32.gmra.mrb[30].mxu1 %vm323_vm4, %v5190_v33 }
 0x2ae   :  { %3965 = vmatprep.mubr.msk.f32.mxu1 %vm5040_vm0, %v5041_v1 }
 0x2b1   :  { %3966 = vmatmul.mubr.msk.f32.gmra.mrb[32].mxu1 %vm323_vm4, %v5196_v34 }
 0x2b2   :  { %3990 = vmatprep.mubr.msk.f32.mxu1 %vm5040_vm0, %v5041_v1 }
 0x2f5   :  { %v4777_v35 = vpop.permute.xlu1 %4776 }
 0x2f6   :  { %v4779_v36 = vunpack.i.h.bf16 %v4777_v35  ;;  %v4778_v37 = vunpack.i.l.bf16 %v4777_v35 }
 0x2f7   :  { %v319_v39 = vpop.permute.xlu0 %318 }
 0x2f8   :  { %v4512_v38 = vpack.c.bf16 %v4779_v36, %v4778_v37 }
 0x2fa   :  { %4513 = vmatpush3.bf16.msra.mxu0 %v4512_v38 }
 0x2fb   :  { %3855 = vmatprep.subr.mxu0 %v5041_v1 }
 0x2fe   :  { %3856 = vmatpush3.msra.mxu0 %v319_v39 }
 0x2ff   :  { %3858 = vmatmul.mubr.msk.f32.vlgmr.msra.gmra.mrb[0].mxu0 %vm323_vm4, %v5133_v24  ;;  %4514 = vmatprep.subr.bf16.mxu0 %v5039_v0 }
 0x300   :  { %4516 = vmatpush3.bf16.msra.mxu0 %v4515_v18  ;;  %3860 = vmatprep.mubr.msk.f32.mxu0 %vm5040_vm0, %v5041_v1 }
 0x301   :  { %3894 = vmatprep.subr.mxu0 %v5041_v1 }
 0x303   :  { %3861 = vmatmul.mubr.msk.f32.gmra.mrb[2].mxu0 %vm323_vm4, %v5141_v25 }
 0x304   :  { %3895 = vmatpush3.msra.mxu0 %v307_v21  ;;  %3863 = vmatprep.mubr.msk.f32.mxu0 %vm5040_vm0, %v5041_v1 }
 0x305   :  { %4557 = vmatprep.subr.bf16.mxu0 %v5039_v0 }
 0x307   :  { %3864 = vmatmul.mubr.msk.f32.gmra.mrb[4].mxu0 %vm323_vm4, %v5148_v26 }
 0x308   :  { %3866 = vmatprep.mubr.msk.f32.mxu0 %vm5040_vm0, %v5041_v1 }
 0x30b   :  { %3867 = vmatmul.mubr.msk.f32.gmra.mrb[6].mxu0 %vm323_vm4, %v5154_v27 }
 0x30c   :  { %3869 = vmatprep.mubr.msk.f32.mxu0 %vm5040_vm0, %v5041_v1 }
 0x30f   :  { %3870 = vmatmul.mubr.msk.f32.gmra.mrb[8].mxu0 %vm323_vm4, %v5160_v28 }
 0x310   :  { %3872 = vmatprep.mubr.msk.f32.mxu0 %vm5040_vm0, %v5041_v1 }
 0x313   :  { %3873 = vmatmul.mubr.msk.f32.gmra.mrb[10].mxu0 %vm323_vm4, %v5166_v29 }
 0x314   :  { %3875 = vmatprep.mubr.msk.f32.mxu0 %vm5040_vm0, %v5041_v1 }
 0x317   :  { %3876 = vmatmul.mubr.msk.f32.gmra.mrb[12].mxu0 %vm323_vm4, %v5172_v30 }
 0x318   :  { %3878 = vmatprep.mubr.msk.f32.mxu0 %vm5040_vm0, %v5041_v1 }
 0x31b   :  { %3879 = vmatmul.mubr.msk.f32.gmra.mrb[14].mxu0 %vm323_vm4, %v5178_v31 }
 0x31c   :  { %3881 = vmatprep.mubr.msk.f32.mxu0 %vm5040_vm0, %v5041_v1 }
 0x31f   :  { %3882 = vmatmul.mubr.msk.f32.gmra.mrb[16].mxu0 %vm323_vm4, %v5184_v32 }
 0x320   :  { %3884 = vmatprep.mubr.msk.f32.mxu0 %vm5040_vm0, %v5041_v1 }
 0x323   :  { %3885 = vmatmul.mubr.msk.f32.gmra.mrb[18].mxu0 %vm323_vm4, %v5190_v33 }
 0x324   :  { %3887 = vmatprep.mubr.msk.f32.mxu0 %vm5040_vm0, %v5041_v1 }
 0x327   :  { %3888 = vmatmul.mubr.msk.f32.gmra.mrb[20].mxu0 %vm323_vm4, %v5196_v34 }
 0x328   :  { %3896 = vmatprep.mubr.msk.f32.mxu0 %vm5040_vm0, %v5041_v1 }
 0x32b   :  { %3897 = vmatmul.mubr.msk.f32.vlgmr.msra.gmra.mrb[0].mxu0 %vm323_vm4, %v5250_v40 }
 0x32c   :  { %3899 = vmatprep.mubr.msk.f32.mxu0 %vm5040_vm0, %v5041_v1 }
 0x32f   :  { %3900 = vmatmul.mubr.msk.f32.gmra.mrb[2].mxu0 %vm323_vm4, %v5256_v41 }
 0x330   :  { %3902 = vmatprep.mubr.msk.f32.mxu0 %vm5040_vm0, %v5041_v1 }
 0x333   :  { %3903 = vmatmul.mubr.msk.f32.gmra.mrb[4].mxu0 %vm323_vm4, %v5262_v42 }
 0x334   :  { %3905 = vmatprep.mubr.msk.f32.mxu0 %vm5040_vm0, %v5041_v1 }
 0x337   :  { %3906 = vmatmul.mubr.msk.f32.gmra.mrb[6].mxu0 %vm323_vm4, %v5268_v43 }
 0x338   :  { %3908 = vmatprep.mubr.msk.f32.mxu0 %vm5040_vm0, %v5041_v1 }
 0x33b   :  { %3909 = vmatmul.mubr.msk.f32.gmra.mrb[8].mxu0 %vm323_vm4, %v5274_v44 }
 0x33c   :  { %3911 = vmatprep.mubr.msk.f32.mxu0 %vm5040_vm0, %v5041_v1 }
 0x33f   :  { %3912 = vmatmul.mubr.msk.f32.gmra.mrb[10].mxu0 %vm323_vm4, %v5280_v45 }
 0x340   :  { %3914 = vmatprep.mubr.msk.f32.mxu0 %vm5040_vm0, %v5041_v1 }
 0x343   :  { %3915 = vmatmul.mubr.msk.f32.gmra.mrb[12].mxu0 %vm323_vm4, %v5286_v46 }
 0x344   :  { %3917 = vmatprep.mubr.msk.f32.mxu0 %vm5040_vm0, %v5041_v1 }
 0x347   :  { %3918 = vmatmul.mubr.msk.f32.gmra.mrb[14].mxu0 %vm323_vm4, %v5292_v47 }
 0x348   :  { %3920 = vmatprep.mubr.msk.f32.mxu0 %vm5040_vm0, %v5041_v1 }
 0x34b   :  { %3921 = vmatmul.mubr.msk.f32.gmra.mrb[16].mxu0 %vm323_vm4, %v5298_v48 }
 0x34c   :  { %3923 = vmatprep.mubr.msk.f32.mxu0 %vm5040_vm0, %v5041_v1 }
 0x34f   :  { %3924 = vmatmul.mubr.msk.f32.gmra.mrb[18].mxu0 %vm323_vm4, %v5304_v49 }
 0x350   :  { %3926 = vmatprep.mubr.msk.f32.mxu0 %vm5040_vm0, %v5041_v1 }
 0x353   :  { %3927 = vmatmul.mubr.msk.f32.gmra.mrb[20].mxu0 %vm323_vm4, %v5310_v50 }
 0x354   :  { %4083 = vmatprep.mubr.msk.f32.mxu0 %vm5040_vm0, %v5041_v1 }
 0x35c   :  { %v696_v51 = vpop.f32.mrb[12].mxu1 }
 0x35d   :  { %v3937_v52 = vpop.f32.mrb[13].mxu1 }
 0x360   :  { %v5316_v53 = vpop.f32.mrb[14].mxu1 }
 0x361   :  { %v3940_v54 = vpop.f32.mrb[15].mxu1 }
 0x364   :  { %v5318_v55 = vpop.f32.mrb[16].mxu1 }
 0x365   :  { %v3943_v56 = vpop.f32.mrb[17].mxu1 }
 0x368   :  { %v5320_v57 = vpop.f32.mrb[18].mxu1 }
 0x369   :  { %v3946_v58 = vpop.f32.mrb[19].mxu1 }
 0x36c   :  { %v5322_v60 = vpop.f32.mrb[20].mxu1 }
 0x36d   :  { %v3949_v62 = vpop.f32.mrb[21].mxu1 }
 0x370   :  { %v5324_v2 = vpop.f32.mrb[22].mxu1 }
 0x371   :  { %v3952_v3 = vpop.f32.mrb[23].mxu1 }
 0x374   :  { %v5326_v5 = vpop.f32.mrb[24].mxu1 }
 0x375   :  { %v3955_v7 = vpop.f32.mrb[25].mxu1 }
 0x378   :  { %v5328_v8 = vpop.f32.mrb[26].mxu1 }
 0x379   :  { %v3958_v9 = vpop.f32.mrb[27].mxu1 }
 0x37c   :  { %v5330_v10 = vpop.f32.mrb[28].mxu1 }
 0x37d   :  { %v3961_v11 = vpop.f32.mrb[29].mxu1 }
 0x380   :  { %v5332_v12 = vpop.f32.mrb[30].mxu1 }
 0x381   :  { %v3964_v13 = vpop.f32.mrb[31].mxu1 }
 0x384   :  { %v5334_v14 = vpop.f32.mrb[32].mxu1 }
 0x385   :  { %v3967_v15 = vpop.f32.mrb[33].mxu1 }
 0x3fe   :  { %v576_v16 = vpop.f32.mrb[0].mxu0 }
 0x3ff   :  { %v3432_v17 = vmul.f32 -1.442695, %v576_v16  ;;  %v3898_v18 = vpop.f32.mrb[1].mxu0 }
 0x401   :  { %4796 = vpow2.f32 %v3432_v17 }
 0x402   :  { %v581_v19 = vpop.f32.mrb[2].mxu0 }
 0x403   :  { %v3433_v20 = vmul.f32 -1.442695, %v581_v19  ;;  %v3901_v21 = vpop.f32.mrb[3].mxu0 }
 0x405   :  { %4798 = vpow2.f32 %v3433_v20 }
 0x406   :  { %v586_v22 = vpop.f32.mrb[4].mxu0 }
 0x407   :  { %v3434_v23 = vmul.f32 -1.442695, %v586_v22  ;;  %v3904_v35 = vpop.f32.mrb[5].mxu0 }
 0x409   :  { %4800 = vpow2.f32 %v3434_v23 }
 0x40a   :  { %v591_v36 = vpop.f32.mrb[6].mxu0 }
 0x40b   :  { %v4797_v37 = vpop.eup %4796  ;;  %v3435_v38 = vmul.f32 -1.442695, %v591_v36  ;;  %v3907_v39 = vpop.f32.mrb[7].mxu0 }
 0x40c   :  { %v783_v52 = vadd.f32 1.0, %v4797_v37 }
 0x40d   :  { %4802 = vpow2.f32 %v3435_v38 }
 0x40e   :  { %4804 = vrcp.f32 %v783_v52  ;;  %v596_v54 = vpop.f32.mrb[8].mxu0 }
 0x40f   :  { %v4799_v56 = vpop.eup %4798  ;;  %v3436_v58 = vmul.f32 -1.442695, %v596_v54  ;;  %v3910_v62 = vpop.f32.mrb[9].mxu0 }
 0x410   :  { %v784_v3 = vadd.f32 1.0, %v4799_v56 }
 0x411   :  { %4806 = vpow2.f32 %v3436_v58 }
 0x412   :  { %4808 = vrcp.f32 %v784_v3  ;;  %v601_v7 = vpop.f32.mrb[10].mxu0 }
 0x413   :  { %v4801_v9 = vpop.eup %4800  ;;  %v3437_v11 = vmul.f32 -1.442695, %v601_v7  ;;  %v3913_v13 = vpop.f32.mrb[11].mxu0 }
 0x414   :  { %v785_v15 = vadd.f32 1.0, %v4801_v9 }
 0x415   :  { %4810 = vpow2.f32 %v3437_v11 }
 0x416   :  { %4812 = vrcp.f32 %v785_v15  ;;  %v606_v16 = vpop.f32.mrb[12].mxu0 }
 0x417   :  { %v4803_v17 = vpop.eup %4802  ;;  %v3438_v18 = vmul.f32 -1.442695, %v606_v16  ;;  %v3916_v19 = vpop.f32.mrb[13].mxu0 }
 0x418   :  { %v4805_v20 = vpop.eup %4804  ;;  %v786_v21 = vadd.f32 1.0, %v4803_v17 }
 0x419   :  { %4814 = vpow2.f32 %v3438_v18  ;;  %v816_v22 = vmul.f32 %v4805_v20, %v696_v51 }
 0x41a   :  { %4816 = vrcp.f32 %v786_v21  ;;  %v611_v23 = vpop.f32.mrb[14].mxu0 }
 0x41b   :  { %v4807_v35 = vpop.eup %4806  ;;  %v3439_v36 = vmul.f32 -1.442695, %v611_v23  ;;  %v3919_v37 = vpop.f32.mrb[15].mxu0 }
 0x41c   :  { %v4809_v38 = vpop.eup %4808  ;;  %v787_v39 = vadd.f32 1.0, %v4807_v35 }
 0x41d   :  { %4818 = vpow2.f32 %v3439_v36  ;;  %v817_v52 = vmul.f32 %v4809_v38, %v5316_v53 }
 0x41e   :  { %4820 = vrcp.f32 %v787_v39  ;;  %v616_v54 = vpop.f32.mrb[16].mxu0 }
 0x41f   :  { %v4811_v56 = vpop.eup %4810  ;;  %v4521_v58 = vpack.c.bf16 %v817_v52, %v816_v22  ;;  %v3440_v62 = vmul.f32 -1.442695, %v616_v54  ;;  %v3922_v3 = vpop.f32.mrb[17].mxu0 }
 0x420   :  { %v4813_v7 = vpop.eup %4812  ;;  %v788_v9 = vadd.f32 1.0, %v4811_v56 }
 0x421   :  { %4822 = vpow2.f32 %v3440_v62  ;;  %v818_v51 = vmul.f32 %v4813_v7, %v5318_v55  ;;  %4522 = vmatpush3.bf16.msra.mxu1 %v4521_v58 }
 0x422   :  { %4824 = vrcp.f32 %v788_v9  ;;  %v621_v11 = vpop.f32.mrb[18].mxu0  ;;  %4523 = vmatprep.subr.bf16.mxu1 %v5039_v0 }
 0x423   :  { %v4815_v13 = vpop.eup %4814  ;;  %v3441_v15 = vmul.f32 -1.442695, %v621_v11  ;;  %v3925_v16 = vpop.f32.mrb[19].mxu0 }
 0x424   :  { %v4817_v53 = vpop.eup %4816  ;;  %v789_v17 = vadd.f32 1.0, %v4815_v13 }
 0x425   :  { %4826 = vpow2.f32 %v3441_v15  ;;  %v819_v18 = vmul.f32 %v4817_v53, %v5320_v57 }
 0x426   :  { %4828 = vrcp.f32 %v789_v17  ;;  %v626_v19 = vpop.f32.mrb[20].mxu0  ;;  %v5351_v17 = vld [vmem:[#allocation4 + $0x520] sm:$0xff] }
 0x427   :  { %v4819_v20 = vpop.eup %4818  ;;  %v4524_v21 = vpack.c.bf16 %v819_v18, %v818_v51  ;;  %v3442_v22 = vmul.f32 -1.442695, %v626_v19  ;;  %v3928_v23 = vpop.f32.mrb[21].mxu0 }
 0x428   :  { %v4821_v55 = vpop.eup %4820  ;;  %v790_v35 = vadd.f32 1.0, %v4819_v20 }
 0x429   :  { %4830 = vpow2.f32 %v3442_v22  ;;  %v820_v36 = vmul.f32 %v4821_v55, %v5322_v60  ;;  %4525 = vmatpush3.bf16.msra.mxu1 %v4524_v21 }
 0x42a   :  { %4832 = vrcp.f32 %v790_v35  ;;  %4526 = vmatprep.subr.bf16.mxu1 %v5039_v0 }
 0x42b   :  { %v4823_v37 = vpop.eup %4822 }
 0x42c   :  { %v4825_v38 = vpop.eup %4824  ;;  %v791_v39 = vadd.f32 1.0, %v4823_v37 }
 0x42d   :  { %v821_v57 = vmul.f32 %v4825_v38, %v5324_v2 }
 0x42e   :  { %4834 = vrcp.f32 %v791_v39 }
 0x42f   :  { %v4827_v52 = vpop.eup %4826  ;;  %v4527_v54 = vpack.c.bf16 %v821_v57, %v820_v36 }
 0x430   :  { %v4829_v56 = vpop.eup %4828  ;;  %v792_v58 = vadd.f32 1.0, %v4827_v52 }
 0x431   :  { %v822_v62 = vmul.f32 %v4829_v56, %v5326_v5  ;;  %4528 = vmatpush3.bf16.msra.mxu1 %v4527_v54 }
 0x432   :  { %4836 = vrcp.f32 %v792_v58  ;;  %4529 = vmatprep.subr.bf16.mxu1 %v5039_v0 }
 0x433   :  { %v4831_v60 = vpop.eup %4830 }
 0x434   :  { %v4833_v3 = vpop.eup %4832  ;;  %v793_v7 = vadd.f32 1.0, %v4831_v60 }
 0x435   :  { %v823_v9 = vmul.f32 %v4833_v3, %v5328_v8  ;;  %v5357_v8 = vld [vmem:[#allocation4 + $0x530] sm:$0xff]  ;;  %v957_v3 = vld [vmem:[#allocation4 + $0xd8] sm:$0xff] }
 0x436   :  { %4838 = vrcp.f32 %v793_v7  ;;  %v959_v7 = vld [vmem:[#allocation4 + $0xe8] sm:$0xff] }
 0x437   :  { %v4530_v51 = vpack.c.bf16 %v823_v9, %v822_v62  ;;  %v4535_v9 = vpack.c.bf16 %v959_v7, %v957_v3 }
 0x438   :  { %v4835_v11 = vpop.eup %4834 }
 0x439   :  { %v824_v2 = vmul.f32 %v4835_v11, %v5330_v10  ;;  %4531 = vmatpush3.bf16.msra.mxu1 %v4530_v51  ;;  %v5363_v10 = vld [vmem:[#allocation4 + $0x540] sm:$0xff]  ;;  %v956_v51 = vld [vmem:[#allocation4 + $0xd0] sm:$0xff] }
 0x43a   :  { %4532 = vmatprep.subr.bf16.mxu1 %v5039_v0  ;;  %v958_v11 = vld [vmem:[#allocation4 + $0xe0] sm:$0xff] }
 0x43c   :  { %v4837_v13 = vpop.eup %4836 }
 0x43d   :  { %v825_v5 = vmul.f32 %v4837_v13, %v5332_v12  ;;  %v831_v12 = vpop.permute.xlu1 %830  ;;  %v961_v13 = vld [vmem:[#allocation4 + $0xf8] sm:$0xff] }
 0x43f   :  { %v4533_v15 = vpack.c.bf16 %v825_v5, %v824_v2  ;;  %v4537_v2 = vpack.c.bf16 %v958_v11, %v956_v51  ;;  %v963_v5 = vld [vmem:[#allocation4 + $0x108] sm:$0xff] }
 0x440   :  { %v4839_v16 = vpop.eup %4838 }
 0x441   :  { %v826_v53 = vmul.f32 %v4839_v16, %v5334_v14  ;;  %4534 = vmatpush3.bf16.msra.mxu1 %v4533_v15  ;;  %v833_v20 = vpop.permute.xlu1 %832  ;;  %v4539_v15 = vpack.c.bf16 %v963_v5, %v961_v13  ;;  %v960_v16 = vld [vmem:[#allocation4 + $0xf0] sm:$0xff] }
 0x442   :  { %3988 = vmatprep.subr.mxu1 %v5041_v1 }
 0x445   :  { %3989 = vmatpush3.msra.mxu1 %v826_v53  ;;  %v835_v38 = vpop.permute.xlu1 %834  ;;  %v962_v53 = vld [vmem:[#allocation4 + $0x100] sm:$0xff] }
 0x446   :  { %3991 = vmatmul.mubr.msk.f32.vlgmr.msra.gmra.mrb[34].mxu1 %vm839_vm5, %v5351_v17  ;;  %4536 = vmatprep.subr.bf16.mxu1 %v4535_v9 }
 0x447   :  { %3993 = vmatprep.mubr.msk.f32.mxu1 %vm5040_vm0, %v5041_v1  ;;  %4538 = vmatpush1.bf16.msra.mxu1 %v4537_v2 }
 0x448   :  { %4540 = vmatprep.subr.bf16.mxu1 %v4539_v15 }
 0x44a   :  { %3994 = vmatmul.mubr.msk.f32.gmra.mrb[36].mxu1 %vm839_vm5, %v5357_v8 }
 0x44b   :  { %3996 = vmatprep.mubr.msk.f32.mxu1 %vm5040_vm0, %v5041_v1 }
 0x44e   :  { %3997 = vmatmul.mubr.msk.f32.gmra.mrb[38].mxu1 %vm839_vm5, %v5363_v10 }
 0x44f   :  { %1058 = vmatprep.mubr.f32.mxu1 %v5041_v1 }
 0x519   :  { %v915_v14 = vpop.f32.mrb[34].mxu1 }
 0x51a   :  { %v916_v18 = vadd.f32 %v915_v14, %v831_v12  ;;  %v3992_v19 = vpop.f32.mrb[35].mxu1  ;;  %v4541_v12 = vpack.c.bf16 %v962_v53, %v960_v16  ;;  %v965_v14 = vld [vmem:[#allocation4 + $0x118] sm:$0xff] }
 0x51c   :  { %v929_v21 = vmax.f32 %v916_v18, 0.0  ;;  %4542 = vmatpush1.bf16.msra.mxu1 %v4541_v12  ;;  %v967_v18 = vld [vmem:[#allocation4 + $0x128] sm:$0xff] }
 0x51d   :  { %v920_v22 = vpop.f32.mrb[36].mxu1  ;;  %v4543_v19 = vpack.c.bf16 %v967_v18, %v965_v14 }
 0x51e   :  { %v921_v23 = vadd.f32 %v920_v22, %v833_v20  ;;  %v3995_v55 = vpop.f32.mrb[37].mxu1  ;;  %v932_v35 = vmul.f32 %v929_v21, %v929_v21  ;;  %v964_v20 = vld [vmem:[#allocation4 + $0x110] sm:$0xff]  ;;  %v966_v22 = vld [vmem:[#allocation4 + $0x120] sm:$0xff] }
 0x51f   :  { %4544 = vmatprep.subr.bf16.mxu1 %v4543_v19  ;;  %v969_v55 = vld [vmem:[#allocation4 + $0x138] sm:$0xff] }
 0x520   :  { %v930_v36 = vmax.f32 %v921_v23, 0.0  ;;  %v935_v37 = vsel %vm146_vm3, %v932_v35, 0.0  ;;  %v4545_v23 = vpack.c.bf16 %v966_v22, %v964_v20  ;;  %v971_v35 = vld [vmem:[#allocation4 + $0x148] sm:$0xff] }
 0x521   :  { %936 = vadd.xlane.f32.xlu0 %v935_v37  ;;  %v925_v39 = vpop.f32.mrb[38].mxu1  ;;  %v4547_v37 = vpack.c.bf16 %v971_v35, %v969_v55 }
 0x522   :  { %v926_v57 = vadd.f32 %v925_v39, %v835_v38  ;;  %v933_v52 = vmul.f32 %v930_v36, %v930_v36  ;;  %v3998_v54 = vpop.f32.mrb[39].mxu1  ;;  %4546 = vmatpush1.bf16.msra.mxu1 %v4545_v23  ;;  %v968_v38 = vld [vmem:[#allocation4 + $0x130] sm:$0xff]  ;;  %v970_v39 = vld [vmem:[#allocation4 + $0x140] sm:$0xff] }
 0x523   :  { %4548 = vmatprep.subr.bf16.mxu1 %v4547_v37 }
 0x524   :  { %v931_v56 = vmax.f32 %v926_v57, 0.0  ;;  %v938_v58 = vsel %vm146_vm3, %v933_v52, 0.0  ;;  %v4549_v57 = vpack.c.bf16 %v970_v39, %v968_v38 }
 0x525   :  { %939 = vadd.xlane.f32.xlu1 %v938_v58 }
 0x526   :  { %v934_v62 = vmul.f32 %v931_v56, %v931_v56  ;;  %4550 = vmatpush1.bf16.msra.mxu1 %v4549_v57 }
 0x527   :  { %4551 = vmatprep.subr.bf16.mxu1 %v5039_v0 }
 0x528   :  { %v941_v60 = vsel %vm146_vm3, %v934_v62, 0.0 }
 0x529   :  { %942 = vadd.xlane.f32.xlu0 %v941_v60 }
 0x5ae   :  { %v937_v52 = vpop.xlane.xlu0 %936 }
 0x5af   :  { %v944_v54 = vmax.f32 %v937_v52, 1e-24 }
 0x5b1   :  { %4840 = vrsqrt.f32 %v944_v54 }
 0x5b2   :  { %v940_v58 = vpop.xlane.xlu1 %939 }
 0x5b3   :  { %v945_v62 = vmax.f32 %v940_v58, 1e-24 }
 0x5b5   :  { %4842 = vrsqrt.f32 %v945_v62 }
 0x5b6   :  { %v943_v60 = vpop.xlane.xlu0 %942 }
 0x5b7   :  { %v946_v3 = vmax.f32 %v943_v60, 1e-24 }
 0x5b9   :  { %4844 = vrsqrt.f32 %v946_v3 }
 0x5bb   :  { %v4841_v7 = vpop.eup %4840 }
 0x5bc   :  { %v950_v9 = vmul.f32 %v4841_v7, %v929_v21  ;;  %v973_v21 = vld [vmem:[#allocation4 + $0x150] ss:$8 sm:$0x3] }
 0x5bd   :  { %v982_v53 = vrot.slane %v973_v21, %v5117_v6 }
 0x5be   :  { %v5373_v51 = vadd.f32 %v950_v9, %v5099_v59 }
 0x5bf   :  { %v4843_v11 = vpop.eup %4842 }
 0x5c0   :  { %3446 = vmatmul.mubr.msk.f32.vlgmr.msra.gmra.mrb[40].mxu1 %vm146_vm3, %v5373_v51  ;;  %v951_v2 = vmul.f32 %v4843_v11, %v930_v36 }
 0x5c1   :  { %1064 = vmatprep.mubr.f32.mxu1 %v5041_v1 }
 0x5c2   :  { %v5379_v13 = vadd.f32 %v951_v2, %v5104_v61  ;;  %v978_v61 = vrot.slane %v973_v21, %v5115_v4 }
 0x5c3   :  { %v4845_v5 = vpop.eup %4844 }
 0x5c4   :  { %3447 = vmatmul.mubr.msk.f32.gmra.mrb[42].mxu1 %vm146_vm3, %v5379_v13  ;;  %v952_v15 = vmul.f32 %v4845_v5, %v931_v56 }
 0x5c5   :  { %1070 = vmatprep.mubr.f32.mxu1 %v5041_v1 }
 0x5c6   :  { %v5385_v59 = vadd.f32 %v952_v15, %v5109_v63 }
 0x5c8   :  { %3448 = vmatmul.mubr.msk.f32.gmra.mrb[44].mxu1 %vm146_vm3, %v5385_v59 }
 0x5c9   :  { %4005 = vmatprep.mubr.msk.f32.mxu1 %vm5040_vm0, %v5041_v1 }
 0x693   :  { %v1060_v36 = vpop.f32.mrb[40].mxu1 }
 0x694   :  { %v1062_v16 = vpop.f32.mrb[41].mxu1  ;;  %v1061_v56 = vadd.f32 %v1060_v36, %v978_v61 }
 0x695   :  { %v1063_v19 = vadd.f32 %v1062_v16, %v982_v53 }
 0x697   :  { %v1066_v12 = vpop.f32.mrb[42].mxu1 }
 0x698   :  { %v1067_v14 = vadd.f32 %v1066_v12, %v978_v61  ;;  %v1068_v18 = vpop.f32.mrb[43].mxu1 }
 0x699   :  { %v1069_v63 = vadd.f32 %v1068_v18, %v982_v53 }
 0x69a   :  { %v4780_v20 = vpack.i.bf16 %v1067_v14, %v1061_v56  ;;  %v4555_v22 = vpack.c.bf16 %v1067_v14, %v1061_v56 }
 0x69b   :  { %v4558_v23 = vpack.c.bf16 %v1069_v63, %v1063_v19  ;;  %v1072_v55 = vpop.f32.mrb[44].mxu1 }
 0x69c   :  { %v1073_v35 = vadd.f32 %v1072_v55, %v978_v61  ;;  %v1074_v37 = vpop.f32.mrb[45].mxu1  ;;  %4781 = vrot.lane.b32.xlu0 %v4780_v20, %s5042_s1 }
 0x69d   :  { %4559 = vmatpush3.bf16.msra.mxu0 %v4558_v23  ;;  %v1075_v38 = vadd.f32 %v1074_v37, %v982_v53 }
 0x69e   :  { %1084 = vrot.lane.b32.xlu1 %v1073_v35, %s5042_s1  ;;  %4081 = vmatprep.subr.mxu0 %v5041_v1 }
 0x6a0   :  { %1531 = vrot.lane.b32.xlu0 %v1069_v63, %s5042_s1 }
 0x6a1   :  { %4082 = vmatpush3.msra.mxu0 %v1075_v38 }
 0x6a2   :  { %1529 = vrot.lane.b32.xlu1 %v1063_v19, %s5042_s1  ;;  %4084 = vmatmul.mubr.msk.f32.vlgmr.msra.gmra.mrb[22].mxu0 %vm323_vm4, %v5133_v24 }
 0x6a3   :  { %4086 = vmatprep.mubr.msk.f32.mxu0 %vm5040_vm0, %v5041_v1  ;;  %4560 = vmatprep.subr.bf16.mxu0 %v5039_v0 }
 0x6a6   :  { %1533 = vrot.lane.b32.xlu1 %v1075_v38, %s5042_s1  ;;  %4087 = vmatmul.mubr.msk.f32.gmra.mrb[24].mxu0 %vm323_vm4, %v5141_v25 }
 0x6a7   :  { %4089 = vmatprep.mubr.msk.f32.mxu0 %vm5040_vm0, %v5041_v1 }
 0x6aa   :  { %4090 = vmatmul.mubr.msk.f32.gmra.mrb[26].mxu0 %vm323_vm4, %v5148_v26 }
 0x6ab   :  { %4092 = vmatprep.mubr.msk.f32.mxu0 %vm5040_vm0, %v5041_v1 }
 0x6ae   :  { %4093 = vmatmul.mubr.msk.f32.gmra.mrb[28].mxu0 %vm323_vm4, %v5154_v27 }
 0x6af   :  { %4095 = vmatprep.mubr.msk.f32.mxu0 %vm5040_vm0, %v5041_v1 }
 0x6b2   :  { %4096 = vmatmul.mubr.msk.f32.gmra.mrb[30].mxu0 %vm323_vm4, %v5160_v28 }
 0x6b3   :  { %4098 = vmatprep.mubr.msk.f32.mxu0 %vm5040_vm0, %v5041_v1 }
 0x6b6   :  { %4099 = vmatmul.mubr.msk.f32.gmra.mrb[32].mxu0 %vm323_vm4, %v5166_v29 }
 0x6b7   :  { %4101 = vmatprep.mubr.msk.f32.mxu0 %vm5040_vm0, %v5041_v1 }
 0x6ba   :  { %4102 = vmatmul.mubr.msk.f32.gmra.mrb[34].mxu0 %vm323_vm4, %v5172_v30 }
 0x6bb   :  { %4104 = vmatprep.mubr.msk.f32.mxu0 %vm5040_vm0, %v5041_v1 }
 0x6be   :  { %4105 = vmatmul.mubr.msk.f32.gmra.mrb[36].mxu0 %vm323_vm4, %v5178_v31 }
 0x6bf   :  { %4107 = vmatprep.mubr.msk.f32.mxu0 %vm5040_vm0, %v5041_v1 }
 0x6c2   :  { %4108 = vmatmul.mubr.msk.f32.gmra.mrb[38].mxu0 %vm323_vm4, %v5184_v32 }
 0x6c3   :  { %4110 = vmatprep.mubr.msk.f32.mxu0 %vm5040_vm0, %v5041_v1 }
 0x6c6   :  { %4111 = vmatmul.mubr.msk.f32.gmra.mrb[40].mxu0 %vm323_vm4, %v5190_v33 }
 0x6c7   :  { %4113 = vmatprep.mubr.msk.f32.mxu0 %vm5040_vm0, %v5041_v1 }
 0x6ca   :  { %4114 = vmatmul.mubr.msk.f32.gmra.mrb[42].mxu0 %vm323_vm4, %v5196_v34 }
 0x6cb   :  { %4138 = vmatprep.mubr.msk.f32.mxu0 %vm5040_vm0, %v5041_v1 }
 0x70e   :  { %v4782_v39 = vpop.permute.xlu0 %4781 }
 0x70f   :  { %v4784_v57 = vunpack.i.h.bf16 %v4782_v39  ;;  %v4783_v52 = vunpack.i.l.bf16 %v4782_v39 }
 0x710   :  { %v1085_v58 = vpop.permute.xlu1 %1084 }
 0x711   :  { %v4552_v54 = vpack.c.bf16 %v4784_v57, %v4783_v52 }
 0x713   :  { %4553 = vmatpush3.bf16.msra.mxu1 %v4552_v54 }
 0x714   :  { %4003 = vmatprep.subr.mxu1 %v5041_v1 }
 0x717   :  { %4004 = vmatpush3.msra.mxu1 %v1085_v58 }
 0x718   :  { %4006 = vmatmul.mubr.msk.f32.vlgmr.msra.gmra.mrb[46].mxu1 %vm323_vm4, %v5133_v24  ;;  %4554 = vmatprep.subr.bf16.mxu1 %v5039_v0 }
 0x719   :  { %4556 = vmatpush3.bf16.msra.mxu1 %v4555_v22  ;;  %4008 = vmatprep.mubr.msk.f32.mxu1 %vm5040_vm0, %v5041_v1 }
 0x71a   :  { %4042 = vmatprep.subr.mxu1 %v5041_v1 }
 0x71c   :  { %4009 = vmatmul.mubr.msk.f32.gmra.mrb[48].mxu1 %vm323_vm4, %v5141_v25 }
 0x71d   :  { %4043 = vmatpush3.msra.mxu1 %v1073_v35  ;;  %4011 = vmatprep.mubr.msk.f32.mxu1 %vm5040_vm0, %v5041_v1 }
 0x71e   :  { %4597 = vmatprep.subr.bf16.mxu1 %v5039_v0 }
 0x720   :  { %4012 = vmatmul.mubr.msk.f32.gmra.mrb[50].mxu1 %vm323_vm4, %v5148_v26 }
 0x721   :  { %4014 = vmatprep.mubr.msk.f32.mxu1 %vm5040_vm0, %v5041_v1 }
 0x724   :  { %4015 = vmatmul.mubr.msk.f32.gmra.mrb[52].mxu1 %vm323_vm4, %v5154_v27 }
 0x725   :  { %4017 = vmatprep.mubr.msk.f32.mxu1 %vm5040_vm0, %v5041_v1 }
 0x728   :  { %4018 = vmatmul.mubr.msk.f32.gmra.mrb[54].mxu1 %vm323_vm4, %v5160_v28 }
 0x729   :  { %4020 = vmatprep.mubr.msk.f32.mxu1 %vm5040_vm0, %v5041_v1 }
 0x72c   :  { %4021 = vmatmul.mubr.msk.f32.gmra.mrb[56].mxu1 %vm323_vm4, %v5166_v29 }
 0x72d   :  { %4023 = vmatprep.mubr.msk.f32.mxu1 %vm5040_vm0, %v5041_v1 }
 0x730   :  { %4024 = vmatmul.mubr.msk.f32.gmra.mrb[58].mxu1 %vm323_vm4, %v5172_v30 }
 0x731   :  { %4026 = vmatprep.mubr.msk.f32.mxu1 %vm5040_vm0, %v5041_v1 }
 0x734   :  { %4027 = vmatmul.mubr.msk.f32.gmra.mrb[60].mxu1 %vm323_vm4, %v5178_v31 }
 0x735   :  { %4029 = vmatprep.mubr.msk.f32.mxu1 %vm5040_vm0, %v5041_v1 }
 0x738   :  { %4030 = vmatmul.mubr.msk.f32.gmra.mrb[62].mxu1 %vm323_vm4, %v5184_v32 }
 0x739   :  { %4032 = vmatprep.mubr.msk.f32.mxu1 %vm5040_vm0, %v5041_v1 }
 0x73c   :  { %4033 = vmatmul.mubr.msk.f32.gmra.mrb[64].mxu1 %vm323_vm4, %v5190_v33 }
 0x73d   :  { %4035 = vmatprep.mubr.msk.f32.mxu1 %vm5040_vm0, %v5041_v1 }
 0x740   :  { %4036 = vmatmul.mubr.msk.f32.gmra.mrb[66].mxu1 %vm323_vm4, %v5196_v34 }
 0x741   :  { %4044 = vmatprep.mubr.msk.f32.mxu1 %vm5040_vm0, %v5041_v1 }
 0x744   :  { %4045 = vmatmul.mubr.msk.f32.vlgmr.msra.gmra.mrb[46].mxu1 %vm323_vm4, %v5250_v40 }
 0x745   :  { %4047 = vmatprep.mubr.msk.f32.mxu1 %vm5040_vm0, %v5041_v1 }
 0x748   :  { %4048 = vmatmul.mubr.msk.f32.gmra.mrb[48].mxu1 %vm323_vm4, %v5256_v41 }
 0x749   :  { %4050 = vmatprep.mubr.msk.f32.mxu1 %vm5040_vm0, %v5041_v1 }
 0x74c   :  { %4051 = vmatmul.mubr.msk.f32.gmra.mrb[50].mxu1 %vm323_vm4, %v5262_v42 }
 0x74d   :  { %4053 = vmatprep.mubr.msk.f32.mxu1 %vm5040_vm0, %v5041_v1 }
 0x750   :  { %4054 = vmatmul.mubr.msk.f32.gmra.mrb[52].mxu1 %vm323_vm4, %v5268_v43 }
 0x751   :  { %4056 = vmatprep.mubr.msk.f32.mxu1 %vm5040_vm0, %v5041_v1 }
 0x754   :  { %4057 = vmatmul.mubr.msk.f32.gmra.mrb[54].mxu1 %vm323_vm4, %v5274_v44 }
 0x755   :  { %4059 = vmatprep.mubr.msk.f32.mxu1 %vm5040_vm0, %v5041_v1 }
 0x758   :  { %4060 = vmatmul.mubr.msk.f32.gmra.mrb[56].mxu1 %vm323_vm4, %v5280_v45 }
 0x759   :  { %4062 = vmatprep.mubr.msk.f32.mxu1 %vm5040_vm0, %v5041_v1 }
 0x75c   :  { %4063 = vmatmul.mubr.msk.f32.gmra.mrb[58].mxu1 %vm323_vm4, %v5286_v46 }
 0x75d   :  { %4065 = vmatprep.mubr.msk.f32.mxu1 %vm5040_vm0, %v5041_v1 }
 0x760   :  { %4066 = vmatmul.mubr.msk.f32.gmra.mrb[60].mxu1 %vm323_vm4, %v5292_v47 }
 0x761   :  { %4068 = vmatprep.mubr.msk.f32.mxu1 %vm5040_vm0, %v5041_v1 }
 0x764   :  { %4069 = vmatmul.mubr.msk.f32.gmra.mrb[62].mxu1 %vm323_vm4, %v5298_v48 }
 0x765   :  { %4071 = vmatprep.mubr.msk.f32.mxu1 %vm5040_vm0, %v5041_v1 }
 0x768   :  { %4072 = vmatmul.mubr.msk.f32.gmra.mrb[64].mxu1 %vm323_vm4, %v5304_v49 }
 0x769   :  { %4074 = vmatprep.mubr.msk.f32.mxu1 %vm5040_vm0, %v5041_v1 }
 0x76c   :  { %4075 = vmatmul.mubr.msk.f32.gmra.mrb[66].mxu1 %vm323_vm4, %v5310_v50 }
 0x76d   :  { %4231 = vmatprep.mubr.msk.f32.mxu1 %vm5040_vm0, %v5041_v1 }
 0x775   :  { %v1395_v24 = vpop.f32.mrb[22].mxu0 }
 0x776   :  { %v4085_v25 = vpop.f32.mrb[23].mxu0 }
 0x779   :  { %v5536_v26 = vpop.f32.mrb[24].mxu0 }
 0x77a   :  { %v4088_v27 = vpop.f32.mrb[25].mxu0 }
 0x77d   :  { %v5538_v28 = vpop.f32.mrb[26].mxu0 }
 0x77e   :  { %v4091_v29 = vpop.f32.mrb[27].mxu0 }
 0x781   :  { %v5540_v30 = vpop.f32.mrb[28].mxu0 }
 0x782   :  { %v4094_v31 = vpop.f32.mrb[29].mxu0 }
 0x785   :  { %v5542_v32 = vpop.f32.mrb[30].mxu0 }
 0x786   :  { %v4097_v33 = vpop.f32.mrb[31].mxu0 }
 0x789   :  { %v5544_v34 = vpop.f32.mrb[32].mxu0 }
 0x78a   :  { %v4100_v40 = vpop.f32.mrb[33].mxu0 }
 0x78d   :  { %v5546_v41 = vpop.f32.mrb[34].mxu0 }
 0x78e   :  { %v4103_v42 = vpop.f32.mrb[35].mxu0 }
 0x791   :  { %v5548_v43 = vpop.f32.mrb[36].mxu0 }
 0x792   :  { %v4106_v44 = vpop.f32.mrb[37].mxu0 }
 0x795   :  { %v5550_v45 = vpop.f32.mrb[38].mxu0 }
 0x796   :  { %v4109_v46 = vpop.f32.mrb[39].mxu0 }
 0x799   :  { %v5552_v47 = vpop.f32.mrb[40].mxu0 }
 0x79a   :  { %v4112_v48 = vpop.f32.mrb[41].mxu0 }
 0x79d   :  { %v5554_v49 = vpop.f32.mrb[42].mxu0 }
 0x79e   :  { %v4115_v50 = vpop.f32.mrb[43].mxu0 }
 0x817   :  { %v1275_v62 = vpop.f32.mrb[46].mxu1 }
 0x818   :  { %v3482_v60 = vmul.f32 -1.442695, %v1275_v62  ;;  %v4046_v3 = vpop.f32.mrb[47].mxu1 }
 0x81a   :  { %4846 = vpow2.f32 %v3482_v60 }
 0x81b   :  { %v1280_v7 = vpop.f32.mrb[48].mxu1 }
 0x81c   :  { %v3483_v9 = vmul.f32 -1.442695, %v1280_v7  ;;  %v4049_v11 = vpop.f32.mrb[49].mxu1 }
 0x81e   :  { %4848 = vpow2.f32 %v3483_v9 }
 0x81f   :  { %v1285_v2 = vpop.f32.mrb[50].mxu1 }
 0x820   :  { %v3484_v5 = vmul.f32 -1.442695, %v1285_v2  ;;  %v4052_v15 = vpop.f32.mrb[51].mxu1 }
 0x822   :  { %4850 = vpow2.f32 %v3484_v5 }
 0x823   :  { %v1290_v21 = vpop.f32.mrb[52].mxu1 }
 0x824   :  { %v4847_v36 = vpop.eup %4846  ;;  %v3485_v61 = vmul.f32 -1.442695, %v1290_v21  ;;  %v4055_v16 = vpop.f32.mrb[53].mxu1 }
 0x825   :  { %v1482_v53 = vadd.f32 1.0, %v4847_v36 }
 0x826   :  { %4852 = vpow2.f32 %v3485_v61 }
 0x827   :  { %4854 = vrcp.f32 %v1482_v53  ;;  %v1295_v12 = vpop.f32.mrb[54].mxu1 }
 0x828   :  { %v4849_v56 = vpop.eup %4848  ;;  %v3486_v14 = vmul.f32 -1.442695, %v1295_v12  ;;  %v4058_v18 = vpop.f32.mrb[55].mxu1 }
 0x829   :  { %v1483_v19 = vadd.f32 1.0, %v4849_v56 }
 0x82a   :  { %4856 = vpow2.f32 %v3486_v14 }
 0x82b   :  { %4858 = vrcp.f32 %v1483_v19  ;;  %v1300_v63 = vpop.f32.mrb[56].mxu1 }
 0x82c   :  { %v4851_v20 = vpop.eup %4850  ;;  %v3487_v22 = vmul.f32 -1.442695, %v1300_v63  ;;  %v4061_v23 = vpop.f32.mrb[57].mxu1 }
 0x82d   :  { %v1484_v55 = vadd.f32 1.0, %v4851_v20 }
 0x82e   :  { %4860 = vpow2.f32 %v3487_v22 }
 0x82f   :  { %4862 = vrcp.f32 %v1484_v55  ;;  %v1305_v35 = vpop.f32.mrb[58].mxu1 }
 0x830   :  { %v4853_v37 = vpop.eup %4852  ;;  %v3488_v38 = vmul.f32 -1.442695, %v1305_v35  ;;  %v4064_v39 = vpop.f32.mrb[59].mxu1 }
 0x831   :  { %v4855_v57 = vpop.eup %4854  ;;  %v1485_v52 = vadd.f32 1.0, %v4853_v37 }
 0x832   :  { %4864 = vpow2.f32 %v3488_v38  ;;  %v1515_v54 = vmul.f32 %v4855_v57, %v1395_v24 }
 0x833   :  { %4866 = vrcp.f32 %v1485_v52  ;;  %v1310_v58 = vpop.f32.mrb[60].mxu1 }
 0x834   :  { %v4857_v25 = vpop.eup %4856  ;;  %v3489_v27 = vmul.f32 -1.442695, %v1310_v58  ;;  %v4067_v29 = vpop.f32.mrb[61].mxu1 }
 0x835   :  { %v4859_v31 = vpop.eup %4858  ;;  %v1486_v33 = vadd.f32 1.0, %v4857_v25 }
 0x836   :  { %4868 = vpow2.f32 %v3489_v27  ;;  %v1516_v40 = vmul.f32 %v4859_v31, %v5536_v26 }
 0x837   :  { %4870 = vrcp.f32 %v1486_v33  ;;  %v1315_v42 = vpop.f32.mrb[62].mxu1 }
 0x838   :  { %v4861_v44 = vpop.eup %4860  ;;  %v4561_v46 = vpack.c.bf16 %v1516_v40, %v1515_v54  ;;  %v3490_v48 = vmul.f32 -1.442695, %v1315_v42  ;;  %v4070_v50 = vpop.f32.mrb[63].mxu1 }
 0x839   :  { %v4863_v62 = vpop.eup %4862  ;;  %v1487_v60 = vadd.f32 1.0, %v4861_v44 }
 0x83a   :  { %4872 = vpow2.f32 %v3490_v48  ;;  %v1517_v24 = vmul.f32 %v4863_v62, %v5538_v28  ;;  %4562 = vmatpush3.bf16.msra.mxu0 %v4561_v46 }
 0x83b   :  { %4874 = vrcp.f32 %v1487_v60  ;;  %v1320_v3 = vpop.f32.mrb[64].mxu1  ;;  %4563 = vmatprep.subr.bf16.mxu0 %v5039_v0 }
 0x83c   :  { %v4865_v7 = vpop.eup %4864  ;;  %v3491_v9 = vmul.f32 -1.442695, %v1320_v3  ;;  %v4073_v11 = vpop.f32.mrb[65].mxu1  ;;  %v1646_v3 = vld [vmem:[#allocation4 + $0x168] sm:$0xff] }
 0x83d   :  { %v4867_v26 = vpop.eup %4866  ;;  %v1488_v2 = vadd.f32 1.0, %v4865_v7  ;;  %v1648_v7 = vld [vmem:[#allocation4 + $0x178] sm:$0xff]  ;;  %v1645_v11 = vld [vmem:[#allocation4 + $0x160] sm:$0xff] }
 0x83e   :  { %4876 = vpow2.f32 %v3491_v9  ;;  %v1518_v5 = vmul.f32 %v4867_v26, %v5540_v30  ;;  %v4575_v9 = vpack.c.bf16 %v1648_v7, %v1646_v3  ;;  %v1647_v26 = vld [vmem:[#allocation4 + $0x170] sm:$0xff]  ;;  %v4966_v7 = vld [vmem:[#allocation4 + $0x420] sm:$0xff] }
 0x83f   :  { %4878 = vrcp.f32 %v1488_v2  ;;  %v1325_v15 = vpop.f32.mrb[66].mxu1  ;;  %v4577_v2 = vpack.c.bf16 %v1647_v26, %v1645_v11  ;;  %v4965_v3 = vld [vmem:[#allocation4 + $0x410] sm:$0xff]  ;;  %v4968_v11 = vld [vmem:[#allocation4 + $0x440] sm:$0xff] }
 0x840   :  { %v4869_v21 = vpop.eup %4868  ;;  %v4564_v36 = vpack.c.bf16 %v1518_v5, %v1517_v24  ;;  %v3492_v61 = vmul.f32 -1.442695, %v1325_v15  ;;  %v4076_v16 = vpop.f32.mrb[67].mxu1  ;;  %v1650_v5 = vld [vmem:[#allocation4 + $0x188] sm:$0xff]  ;;  %v1652_v15 = vld [vmem:[#allocation4 + $0x198] sm:$0xff]  ;;  %v4969_v26 = vld [vmem:[#allocation4 + $0x450] sm:$0xff] }
 0x841   :  { %v4871_v28 = vpop.eup %4870  ;;  %v1489_v53 = vadd.f32 1.0, %v4869_v21  ;;  %v4579_v21 = vpack.c.bf16 %v1652_v15, %v1650_v5 }
 0x842   :  { %4880 = vpow2.f32 %v3492_v61  ;;  %v1519_v12 = vmul.f32 %v4871_v28, %v5542_v32  ;;  %4565 = vmatpush3.bf16.msra.mxu0 %v4564_v36  ;;  %v1649_v36 = vld [vmem:[#allocation4 + $0x180] sm:$0xff]  ;;  %v1651_v61 = vld [vmem:[#allocation4 + $0x190] sm:$0xff]  ;;  %v1654_v28 = vld [vmem:[#allocation4 + $0x1a8] sm:$0xff] }
 0x843   :  { %4882 = vrcp.f32 %v1489_v53  ;;  %4566 = vmatprep.subr.bf16.mxu0 %v5039_v0  ;;  %v4581_v16 = vpack.c.bf16 %v1651_v61, %v1649_v36  ;;  %v1656_v53 = vld [vmem:[#allocation4 + $0x1b8] sm:$0xff] }
 0x844   :  { %v4873_v56 = vpop.eup %4872 }
 0x845   :  { %v4875_v14 = vpop.eup %4874  ;;  %v1490_v18 = vadd.f32 1.0, %v4873_v56  ;;  %v1653_v56 = vld [vmem:[#allocation4 + $0x1a0] sm:$0xff] }
 0x846   :  { %v1520_v30 = vmul.f32 %v4875_v14, %v5544_v34  ;;  %v1655_v14 = vld [vmem:[#allocation4 + $0x1b0] sm:$0xff] }
 0x847   :  { %4884 = vrcp.f32 %v1490_v18  ;;  %v4585_v18 = vpack.c.bf16 %v1655_v14, %v1653_v56  ;;  %v4975_v56 = vld [vmem:[#allocation4 + $0x4b0] sm:$0xff]  ;;  %v4976_v14 = vld [vmem:[#allocation4 + $0x4c0] sm:$0xff] }
 0x848   :  { %v4877_v19 = vpop.eup %4876  ;;  %v4567_v63 = vpack.c.bf16 %v1520_v30, %v1519_v12  ;;  %v4583_v12 = vpack.c.bf16 %v1656_v53, %v1654_v28  ;;  %v1658_v30 = vld [vmem:[#allocation4 + $0x1c8] sm:$0xff]  ;;  %v4972_v28 = vld [vmem:[#allocation4 + $0x480] sm:$0xff]  ;;  %v4973_v53 = vld [vmem:[#allocation4 + $0x490] sm:$0xff] }
 0x849   :  { %v4879_v20 = vpop.eup %4878  ;;  %v1491_v22 = vadd.f32 1.0, %v4877_v19  ;;  %v1660_v19 = vld [vmem:[#allocation4 + $0x1d8] sm:$0xff] }
 0x84a   :  { %v1521_v23 = vmul.f32 %v4879_v20, %v5546_v41  ;;  %4568 = vmatpush3.bf16.msra.mxu0 %v4567_v63  ;;  %v4587_v63 = vpack.c.bf16 %v1660_v19, %v1658_v30  ;;  %v1657_v20 = vld [vmem:[#allocation4 + $0x1c0] sm:$0xff]  ;;  %v4979_v19 = vld [vmem:[#allocation4 + $0x4f0] sm:$0xff] }
 0x84b   :  { %4886 = vrcp.f32 %v1491_v22  ;;  %4569 = vmatprep.subr.bf16.mxu0 %v5039_v0  ;;  %v1659_v22 = vld [vmem:[#allocation4 + $0x1d0] sm:$0xff]  ;;  %v4978_v30 = vld [vmem:[#allocation4 + $0x4e0] sm:$0xff] }
 0x84c   :  { %v4881_v32 = vpop.eup %4880 }
 0x84d   :  { %v4883_v55 = vpop.eup %4882  ;;  %v1492_v35 = vadd.f32 1.0, %v4881_v32 }
 0x84e   :  { %v1522_v37 = vmul.f32 %v4883_v55, %v5548_v43  ;;  %v1530_v43 = vpop.permute.xlu1 %1529 }
 0x84f   :  { %4888 = vrcp.f32 %v1492_v35 }
 0x850   :  { %v4570_v38 = vpack.c.bf16 %v1522_v37, %v1521_v23  ;;  %v4589_v23 = vpack.c.bf16 %v1659_v22, %v1657_v20  ;;  %v4981_v20 = vld [vmem:[#allocation4 + $0x510] sm:$0xff] }
 0x851   :  { %v4885_v39 = vpop.eup %4884 }
 0x852   :  { %v1523_v34 = vmul.f32 %v4885_v39, %v5550_v45  ;;  %4571 = vmatpush3.bf16.msra.mxu0 %v4570_v38  ;;  %v1534_v42 = vpop.permute.xlu1 %1533 }
 0x853   :  { %4572 = vmatprep.subr.bf16.mxu0 %v5039_v0 }
 0x855   :  { %v4887_v57 = vpop.eup %4886 }
 0x856   :  { %v1524_v41 = vmul.f32 %v4887_v57, %v5552_v47 }
 0x858   :  { %v4573_v52 = vpack.c.bf16 %v1524_v41, %v1523_v34 }
 0x859   :  { %v4889_v54 = vpop.eup %4888 }
 0x85a   :  { %v1525_v58 = vmul.f32 %v4889_v54, %v5554_v49  ;;  %4574 = vmatpush3.bf16.msra.mxu0 %v4573_v52 }
 0x85b   :  { %4136 = vmatprep.subr.mxu0 %v5041_v1 }
 0x85e   :  { %4137 = vmatpush3.msra.mxu0 %v1525_v58 }
 0x85f   :  { %4139 = vmatmul.mubr.msk.f32.vlgmr.msra.gmra.mrb[44].mxu0 %vm839_vm5, %v5351_v17  ;;  %v1532_v17 = vpop.permute.xlu0 %1531  ;;  %4576 = vmatprep.subr.bf16.mxu0 %v4575_v9  ;;  %v4967_v9 = vld [vmem:[#allocation4 + $0x430] sm:$0xff] }
 0x860   :  { %4141 = vmatprep.mubr.msk.f32.mxu0 %vm5040_vm0, %v5041_v1  ;;  %4578 = vmatpush1.bf16.msra.mxu0 %v4577_v2  ;;  %v4970_v2 = vld [vmem:[#allocation4 + $0x460] sm:$0xff] }
 0x861   :  { %4580 = vmatprep.subr.bf16.mxu0 %v4579_v21 }
 0x863   :  { %4142 = vmatmul.mubr.msk.f32.gmra.mrb[46].mxu0 %vm839_vm5, %v5357_v8 }
 0x864   :  { %4144 = vmatprep.mubr.msk.f32.mxu0 %vm5040_vm0, %v5041_v1  ;;  %4582 = vmatpush1.bf16.msra.mxu0 %v4581_v16  ;;  %v4971_v16 = vld [vmem:[#allocation4 + $0x470] sm:$0xff] }
 0x865   :  { %4584 = vmatprep.subr.bf16.mxu0 %v4583_v12  ;;  %v4974_v12 = vld [vmem:[#allocation4 + $0x4a0] sm:$0xff] }
 0x867   :  { %4145 = vmatmul.mubr.msk.f32.gmra.mrb[48].mxu0 %vm839_vm5, %v5363_v10 }
 0x868   :  { %1747 = vmatprep.mubr.f32.mxu0 %v5041_v1  ;;  %4586 = vmatpush1.bf16.msra.mxu0 %v4585_v18  ;;  %v4977_v18 = vld [vmem:[#allocation4 + $0x4d0] sm:$0xff] }
 0x869   :  { %4588 = vmatprep.subr.bf16.mxu0 %v4587_v63  ;;  %v4980_v63 = vld [vmem:[#allocation4 + $0x500] sm:$0xff] }
 0x86c   :  { %4590 = vmatpush1.bf16.msra.mxu0 %v4589_v23 }
 0x86d   :  { %4591 = vmatprep.subr.bf16.mxu0 %v5039_v0 }
 0x932   :  { %v1604_v45 = vpop.f32.mrb[44].mxu0 }
 0x933   :  { %v1605_v47 = vadd.f32 %v1604_v45, %v1530_v43  ;;  %v4140_v49 = vpop.f32.mrb[45].mxu0 }
 0x935   :  { %v5582_v25 = vmax.f32 %v1605_v47, 0.0  ;;  %v1662_v47 = vld [vmem:[#allocation4 + $0x1e0] ss:$8 sm:$0x3] }
 0x936   :  { %v1609_v27 = vpop.f32.mrb[46].mxu0 }
 0x937   :  { %v1610_v29 = vadd.f32 %v1609_v27, %v1532_v17  ;;  %v4143_v31 = vpop.f32.mrb[47].mxu0  ;;  %v1621_v8 = vmul.f32 %v5582_v25, %v5582_v25  ;;  %v1671_v17 = vrot.slane %v1662_v47, %v5117_v6 }
 0x939   :  { %v1619_v33 = vmax.f32 %v1610_v29, 0.0  ;;  %v1624_v40 = vsel %vm146_vm3, %v1621_v8, 0.0 }
 0x93a   :  { %1625 = vadd.xlane.f32.xlu0 %v1624_v40  ;;  %v1614_v10 = vpop.f32.mrb[48].mxu0 }
 0x93b   :  { %v1615_v44 = vadd.f32 %v1614_v10, %v1534_v42  ;;  %v1622_v46 = vmul.f32 %v1619_v33, %v1619_v33  ;;  %v4146_v48 = vpop.f32.mrb[49].mxu0 }
 0x93c   :  { %v4960_v48 = vld [vmem:[#allocation4 + $0x3c0] sm:$0xff] }
 0x93d   :  { %v1620_v50 = vmax.f32 %v1615_v44, 0.0  ;;  %v1627_v62 = vsel %vm146_vm3, %v1622_v46, 0.0 }
 0x93e   :  { %1628 = vadd.xlane.f32.xlu1 %v1627_v62  ;;  %v4962_v62 = vld [vmem:[#allocation4 + $0x3e0] sm:$0xff] }
 0x93f   :  { %v1623_v60 = vmul.f32 %v1620_v50, %v1620_v50 }
 0x941   :  { %v1630_v24 = vsel %vm146_vm3, %v1623_v60, 0.0  ;;  %v4963_v60 = vld [vmem:[#allocation4 + $0x3f0] sm:$0xff] }
 0x942   :  { %1631 = vadd.xlane.f32.xlu0 %v1630_v24  ;;  %v4964_v24 = vld [vmem:[#allocation4 + $0x400] sm:$0xff] }
 0x9c7   :  { %v1626_v32 = vpop.xlane.xlu0 %1625 }
 0x9c8   :  { %v1633_v55 = vmax.f32 %v1626_v32, 1e-24 }
 0x9ca   :  { %4890 = vrsqrt.f32 %v1633_v55 }
 0x9cb   :  { %v1629_v35 = vpop.xlane.xlu1 %1628 }
 0x9cc   :  { %v1634_v37 = vmax.f32 %v1629_v35, 1e-24 }
 0x9ce   :  { %4892 = vrsqrt.f32 %v1634_v37 }
 0x9cf   :  { %v1632_v38 = vpop.xlane.xlu0 %1631 }
 0x9d0   :  { %v1635_v39 = vmax.f32 %v1632_v38, 1e-24 }
 0x9d2   :  { %4894 = vrsqrt.f32 %v1635_v39 }
 0x9d4   :  { %v4891_v34 = vpop.eup %4890 }
 0x9d5   :  { %v1639_v57 = vmul.f32 %v4891_v34, %v5582_v25 }
 0x9d7   :  { %v5592_v41 = vadd.f32 %v1639_v57, %v5373_v51 }
 0x9d8   :  { %v4893_v52 = vpop.eup %4892 }
 0x9d9   :  { %3496 = vmatmul.mubr.msk.f32.vlgmr.msra.gmra.mrb[50].mxu0 %vm146_vm3, %v5592_v41  ;;  %v1640_v54 = vmul.f32 %v4893_v52, %v1619_v33 }
 0x9da   :  { %1753 = vmatprep.mubr.f32.mxu0 %v5041_v1 }
 0x9db   :  { %v5598_v58 = vadd.f32 %v1640_v54, %v5379_v13  ;;  %v1667_v13 = vrot.slane %v1662_v47, %v5115_v4 }
 0x9dc   :  { %v4895_v43 = vpop.eup %4894 }
 0x9dd   :  { %3497 = vmatmul.mubr.msk.f32.gmra.mrb[52].mxu0 %vm146_vm3, %v5598_v58  ;;  %v1641_v45 = vmul.f32 %v4895_v43, %v1620_v50  ;;  %v4961_v50 = vld [vmem:[#allocation4 + $0x3d0] sm:$0xff] }
 0x9de   :  { %1759 = vmatprep.mubr.f32.mxu0 %v5041_v1 }
 0x9df   :  { %v5604_v51 = vadd.f32 %v1641_v45, %v5385_v59 }
 0x9e1   :  { %3498 = vmatmul.mubr.msk.f32.gmra.mrb[54].mxu0 %vm146_vm3, %v5604_v51 }
 0x9e2   :  { %4153 = vmatprep.mubr.msk.f32.mxu0 %vm5040_vm0, %v5041_v1 }
 0xaac   :  { %v1749_v49 = vpop.f32.mrb[50].mxu0 }
 0xaad   :  { %v1751_v25 = vpop.f32.mrb[51].mxu0  ;;  %v5612_v29 = vadd.f32 %v1749_v49, %v1667_v13 }
 0xaae   :  { %v1752_v8 = vadd.f32 %v1751_v25, %v1671_v17 }
 0xab0   :  { %v1755_v27 = vpop.f32.mrb[52].mxu0 }
 0xab1   :  { %v5614_v31 = vadd.f32 %v1755_v27, %v1667_v13  ;;  %v1757_v59 = vpop.f32.mrb[53].mxu0 }
 0xab2   :  { %v1758_v33 = vadd.f32 %v1757_v59, %v1671_v17 }
 0xab3   :  { %v4785_v40 = vpack.i.bf16 %v5614_v31, %v5612_v29  ;;  %v4595_v42 = vpack.c.bf16 %v5614_v31, %v5612_v29 }
 0xab4   :  { %v4598_v10 = vpack.c.bf16 %v1758_v33, %v1752_v8  ;;  %v1761_v44 = vpop.f32.mrb[54].mxu0 }
 0xab5   :  { %v1762_v4 = vadd.f32 %v1761_v44, %v1667_v13  ;;  %v1763_v46 = vpop.f32.mrb[55].mxu0  ;;  %4786 = vrot.lane.b32.xlu0 %v4785_v40, %s5042_s1 }
 0xab6   :  { %4599 = vmatpush3.bf16.msra.mxu1 %v4598_v10  ;;  %v1764_v6 = vadd.f32 %v1763_v46, %v1671_v17 }
 0xab7   :  { %1773 = vrot.lane.b32.xlu1 %v1762_v4, %s5042_s1  ;;  %4229 = vmatprep.subr.mxu1 %v5041_v1 }
 0xab9   :  { %2220 = vrot.lane.b32.xlu0 %v1758_v33, %s5042_s1 }
 0xaba   :  { %4230 = vmatpush3.msra.mxu1 %v1764_v6 }
 0xabb   :  { %2218 = vrot.lane.b32.xlu1 %v1752_v8, %s5042_s1  ;;  %4232 = vmatmul.mubr.msk.f32.vlgmr.msra.gmra.mrb[68].mxu1 %vm323_vm4, %v4960_v48 }
 0xabc   :  { %4234 = vmatprep.mubr.msk.f32.mxu1 %vm5040_vm0, %v5041_v1  ;;  %4600 = vmatprep.subr.bf16.mxu1 %v5039_v0 }
 0xabf   :  { %2222 = vrot.lane.b32.xlu1 %v1764_v6, %s5042_s1  ;;  %4235 = vmatmul.mubr.msk.f32.gmra.mrb[70].mxu1 %vm323_vm4, %v4961_v50 }
 0xac0   :  { %4237 = vmatprep.mubr.msk.f32.mxu1 %vm5040_vm0, %v5041_v1 }
 0xac3   :  { %4238 = vmatmul.mubr.msk.f32.gmra.mrb[72].mxu1 %vm323_vm4, %v4962_v62 }
 0xac4   :  { %4240 = vmatprep.mubr.msk.f32.mxu1 %vm5040_vm0, %v5041_v1 }
 0xac7   :  { %4241 = vmatmul.mubr.msk.f32.gmra.mrb[74].mxu1 %vm323_vm4, %v4963_v60 }
 0xac8   :  { %4243 = vmatprep.mubr.msk.f32.mxu1 %vm5040_vm0, %v5041_v1 }
 0xacb   :  { %4244 = vmatmul.mubr.msk.f32.gmra.mrb[76].mxu1 %vm323_vm4, %v4964_v24 }
 0xacc   :  { %4246 = vmatprep.mubr.msk.f32.mxu1 %vm5040_vm0, %v5041_v1 }
 0xacf   :  { %4247 = vmatmul.mubr.msk.f32.gmra.mrb[78].mxu1 %vm323_vm4, %v4965_v3 }
 0xad0   :  { %4249 = vmatprep.mubr.msk.f32.mxu1 %vm5040_vm0, %v5041_v1 }
 0xad3   :  { %4250 = vmatmul.mubr.msk.f32.gmra.mrb[80].mxu1 %vm323_vm4, %v4966_v7 }
 0xad4   :  { %4252 = vmatprep.mubr.msk.f32.mxu1 %vm5040_vm0, %v5041_v1 }
 0xad7   :  { %4253 = vmatmul.mubr.msk.f32.gmra.mrb[82].mxu1 %vm323_vm4, %v4967_v9 }
 0xad8   :  { %4255 = vmatprep.mubr.msk.f32.mxu1 %vm5040_vm0, %v5041_v1 }
 0xadb   :  { %4256 = vmatmul.mubr.msk.f32.gmra.mrb[84].mxu1 %vm323_vm4, %v4968_v11 }
 0xadc   :  { %4258 = vmatprep.mubr.msk.f32.mxu1 %vm5040_vm0, %v5041_v1 }
 0xadf   :  { %4259 = vmatmul.mubr.msk.f32.gmra.mrb[86].mxu1 %vm323_vm4, %v4969_v26 }
 0xae0   :  { %4261 = vmatprep.mubr.msk.f32.mxu1 %vm5040_vm0, %v5041_v1 }
 0xae3   :  { %4262 = vmatmul.mubr.msk.f32.gmra.mrb[88].mxu1 %vm323_vm4, %v4970_v2 }
 0xae4   :  { %4286 = vmatprep.mubr.msk.f32.mxu1 %vm5040_vm0, %v5041_v1 }
 0xb27   :  { %v4787_v5 = vpop.permute.xlu0 %4786 }
 0xb28   :  { %v4789_v15 = vunpack.i.h.bf16 %v4787_v5  ;;  %v4788_v21 = vunpack.i.l.bf16 %v4787_v5 }
 0xb29   :  { %v1774_v61 = vpop.permute.xlu1 %1773 }
 0xb2a   :  { %v4592_v36 = vpack.c.bf16 %v4789_v15, %v4788_v21 }
 0xb2c   :  { %4593 = vmatpush3.bf16.msra.mxu0 %v4592_v36 }
 0xb2d   :  { %4151 = vmatprep.subr.mxu0 %v5041_v1 }
 0xb30   :  { %4152 = vmatpush3.msra.mxu0 %v1774_v61 }
 0xb31   :  { %4154 = vmatmul.mubr.msk.f32.vlgmr.msra.gmra.mrb[56].mxu0 %vm323_vm4, %v4960_v48  ;;  %4594 = vmatprep.subr.bf16.mxu0 %v5039_v0 }
 0xb32   :  { %4596 = vmatpush3.bf16.msra.mxu0 %v4595_v42  ;;  %4156 = vmatprep.mubr.msk.f32.mxu0 %vm5040_vm0, %v5041_v1 }
 0xb33   :  { %4190 = vmatprep.subr.mxu0 %v5041_v1 }
 0xb35   :  { %4157 = vmatmul.mubr.msk.f32.gmra.mrb[58].mxu0 %vm323_vm4, %v4961_v50 }
 0xb36   :  { %4191 = vmatpush3.msra.mxu0 %v1762_v4  ;;  %4159 = vmatprep.mubr.msk.f32.mxu0 %vm5040_vm0, %v5041_v1 }
 0xb37   :  { %4627 = vmatprep.subr.bf16.mxu0 %v5039_v0 }
 0xb39   :  { %4160 = vmatmul.mubr.msk.f32.gmra.mrb[60].mxu0 %vm323_vm4, %v4962_v62 }
 0xb3a   :  { %4162 = vmatprep.mubr.msk.f32.mxu0 %vm5040_vm0, %v5041_v1 }
 0xb3d   :  { %4163 = vmatmul.mubr.msk.f32.gmra.mrb[62].mxu0 %vm323_vm4, %v4963_v60 }
 0xb3e   :  { %4165 = vmatprep.mubr.msk.f32.mxu0 %vm5040_vm0, %v5041_v1 }
 0xb41   :  { %4166 = vmatmul.mubr.msk.f32.gmra.mrb[64].mxu0 %vm323_vm4, %v4964_v24 }
 0xb42   :  { %4168 = vmatprep.mubr.msk.f32.mxu0 %vm5040_vm0, %v5041_v1 }
 0xb45   :  { %4169 = vmatmul.mubr.msk.f32.gmra.mrb[66].mxu0 %vm323_vm4, %v4965_v3 }
 0xb46   :  { %4171 = vmatprep.mubr.msk.f32.mxu0 %vm5040_vm0, %v5041_v1 }
 0xb49   :  { %4172 = vmatmul.mubr.msk.f32.gmra.mrb[68].mxu0 %vm323_vm4, %v4966_v7 }
 0xb4a   :  { %4174 = vmatprep.mubr.msk.f32.mxu0 %vm5040_vm0, %v5041_v1 }
 0xb4d   :  { %4175 = vmatmul.mubr.msk.f32.gmra.mrb[70].mxu0 %vm323_vm4, %v4967_v9 }
 0xb4e   :  { %4177 = vmatprep.mubr.msk.f32.mxu0 %vm5040_vm0, %v5041_v1 }
 0xb51   :  { %4178 = vmatmul.mubr.msk.f32.gmra.mrb[72].mxu0 %vm323_vm4, %v4968_v11 }
 0xb52   :  { %4180 = vmatprep.mubr.msk.f32.mxu0 %vm5040_vm0, %v5041_v1 }
 0xb55   :  { %4181 = vmatmul.mubr.msk.f32.gmra.mrb[74].mxu0 %vm323_vm4, %v4969_v26 }
 0xb56   :  { %4183 = vmatprep.mubr.msk.f32.mxu0 %vm5040_vm0, %v5041_v1 }
 0xb59   :  { %4184 = vmatmul.mubr.msk.f32.gmra.mrb[76].mxu0 %vm323_vm4, %v4970_v2 }
 0xb5a   :  { %4192 = vmatprep.mubr.msk.f32.mxu0 %vm5040_vm0, %v5041_v1 }
 0xb5d   :  { %4193 = vmatmul.mubr.msk.f32.vlgmr.msra.gmra.mrb[56].mxu0 %vm323_vm4, %v4971_v16 }
 0xb5e   :  { %4195 = vmatprep.mubr.msk.f32.mxu0 %vm5040_vm0, %v5041_v1 }
 0xb61   :  { %4196 = vmatmul.mubr.msk.f32.gmra.mrb[58].mxu0 %vm323_vm4, %v4972_v28 }
 0xb62   :  { %4198 = vmatprep.mubr.msk.f32.mxu0 %vm5040_vm0, %v5041_v1 }
 0xb65   :  { %4199 = vmatmul.mubr.msk.f32.gmra.mrb[60].mxu0 %vm323_vm4, %v4973_v53 }
 0xb66   :  { %4201 = vmatprep.mubr.msk.f32.mxu0 %vm5040_vm0, %v5041_v1 }
 0xb69   :  { %4202 = vmatmul.mubr.msk.f32.gmra.mrb[62].mxu0 %vm323_vm4, %v4974_v12 }
 0xb6a   :  { %4204 = vmatprep.mubr.msk.f32.mxu0 %vm5040_vm0, %v5041_v1 }
 0xb6d   :  { %4205 = vmatmul.mubr.msk.f32.gmra.mrb[64].mxu0 %vm323_vm4, %v4975_v56 }
 0xb6e   :  { %4207 = vmatprep.mubr.msk.f32.mxu0 %vm5040_vm0, %v5041_v1 }
 0xb71   :  { %4208 = vmatmul.mubr.msk.f32.gmra.mrb[66].mxu0 %vm323_vm4, %v4976_v14 }
 0xb72   :  { %4210 = vmatprep.mubr.msk.f32.mxu0 %vm5040_vm0, %v5041_v1 }
 0xb75   :  { %4211 = vmatmul.mubr.msk.f32.gmra.mrb[68].mxu0 %vm323_vm4, %v4977_v18 }
 0xb76   :  { %4213 = vmatprep.mubr.msk.f32.mxu0 %vm5040_vm0, %v5041_v1 }
 0xb79   :  { %4214 = vmatmul.mubr.msk.f32.gmra.mrb[70].mxu0 %vm323_vm4, %v4978_v30 }
 0xb7a   :  { %4216 = vmatprep.mubr.msk.f32.mxu0 %vm5040_vm0, %v5041_v1 }
 0xb7d   :  { %4217 = vmatmul.mubr.msk.f32.gmra.mrb[72].mxu0 %vm323_vm4, %v4979_v19 }
 0xb7e   :  { %4219 = vmatprep.mubr.msk.f32.mxu0 %vm5040_vm0, %v5041_v1 }
 0xb81   :  { %4220 = vmatmul.mubr.msk.f32.gmra.mrb[74].mxu0 %vm323_vm4, %v4980_v63 }
 0xb82   :  { %4222 = vmatprep.mubr.msk.f32.mxu0 %vm5040_vm0, %v5041_v1 }
 0xb85   :  { %4223 = vmatmul.mubr.msk.f32.gmra.mrb[76].mxu0 %vm323_vm4, %v4981_v20 }
 0xb86   :  { %4344 = vmatprep.mubr.msk.f32.mxu0 %vm5040_vm0, %v5041_v1 }
 0xb8e   :  { %v2084_v22 = vpop.f32.mrb[68].mxu1 }
 0xb8f   :  { %v4233_v23 = vpop.f32.mrb[69].mxu1 }
 0xb92   :  { %v5730_v32 = vpop.f32.mrb[70].mxu1 }
 0xb93   :  { %v4236_v55 = vpop.f32.mrb[71].mxu1 }
 0xb96   :  { %v5732_v35 = vpop.f32.mrb[72].mxu1 }
 0xb97   :  { %v4239_v37 = vpop.f32.mrb[73].mxu1 }
 0xb9a   :  { %v5734_v38 = vpop.f32.mrb[74].mxu1 }
 0xb9b   :  { %v4242_v39 = vpop.f32.mrb[75].mxu1 }
 0xb9e   :  { %v5736_v34 = vpop.f32.mrb[76].mxu1 }
 0xb9f   :  { %v4245_v57 = vpop.f32.mrb[77].mxu1 }
 0xba2   :  { %v5738_v52 = vpop.f32.mrb[78].mxu1 }
 0xba3   :  { %v4248_v54 = vpop.f32.mrb[79].mxu1 }
 0xba6   :  { %v5740_v43 = vpop.f32.mrb[80].mxu1 }
 0xba7   :  { %v4251_v45 = vpop.f32.mrb[81].mxu1 }
 0xbaa   :  { %v5742_v47 = vpop.f32.mrb[82].mxu1 }
 0xbab   :  { %v4254_v49 = vpop.f32.mrb[83].mxu1 }
 0xbae   :  { %v5744_v13 = vpop.f32.mrb[84].mxu1 }
 0xbaf   :  { %v4257_v25 = vpop.f32.mrb[85].mxu1 }
 0xbb2   :  { %v5746_v17 = vpop.f32.mrb[86].mxu1 }
 0xbb3   :  { %v4260_v27 = vpop.f32.mrb[87].mxu1 }
 0xbb6   :  { %v5748_v29 = vpop.f32.mrb[88].mxu1 }
 0xbb7   :  { %v4263_v31 = vpop.f32.mrb[89].mxu1 }
 0xc30   :  { %v1964_v59 = vpop.f32.mrb[56].mxu0 }
 0xc31   :  { %v3532_v8 = vmul.f32 -1.442695, %v1964_v59  ;;  %v4194_v33 = vpop.f32.mrb[57].mxu0 }
 0xc33   :  { %4896 = vpow2.f32 %v3532_v8 }
 0xc34   :  { %v1969_v40 = vpop.f32.mrb[58].mxu0 }
 0xc35   :  { %v3533_v42 = vmul.f32 -1.442695, %v1969_v40  ;;  %v4197_v10 = vpop.f32.mrb[59].mxu0 }
 0xc37   :  { %4898 = vpow2.f32 %v3533_v42 }
 0xc38   :  { %v1974_v44 = vpop.f32.mrb[60].mxu0 }
 0xc39   :  { %v3534_v4 = vmul.f32 -1.442695, %v1974_v44  ;;  %v4200_v46 = vpop.f32.mrb[61].mxu0 }
 0xc3b   :  { %4900 = vpow2.f32 %v3534_v4 }
 0xc3c   :  { %v1979_v6 = vpop.f32.mrb[62].mxu0 }
 0xc3d   :  { %v4897_v48 = vpop.eup %4896  ;;  %v3535_v50 = vmul.f32 -1.442695, %v1979_v6  ;;  %v4203_v62 = vpop.f32.mrb[63].mxu0 }
 0xc3e   :  { %v2171_v60 = vadd.f32 1.0, %v4897_v48 }
 0xc3f   :  { %4902 = vpow2.f32 %v3535_v50 }
 0xc40   :  { %4904 = vrcp.f32 %v2171_v60  ;;  %v1984_v24 = vpop.f32.mrb[64].mxu0 }
 0xc41   :  { %v4899_v3 = vpop.eup %4898  ;;  %v3536_v7 = vmul.f32 -1.442695, %v1984_v24  ;;  %v4206_v9 = vpop.f32.mrb[65].mxu0 }
 0xc42   :  { %v2172_v11 = vadd.f32 1.0, %v4899_v3 }
 0xc43   :  { %4906 = vpow2.f32 %v3536_v7 }
 0xc44   :  { %4908 = vrcp.f32 %v2172_v11  ;;  %v1989_v26 = vpop.f32.mrb[66].mxu0 }
 0xc45   :  { %v4901_v2 = vpop.eup %4900  ;;  %v3537_v5 = vmul.f32 -1.442695, %v1989_v26  ;;  %v4209_v15 = vpop.f32.mrb[67].mxu0 }
 0xc46   :  { %v2173_v21 = vadd.f32 1.0, %v4901_v2 }
 0xc47   :  { %4910 = vpow2.f32 %v3537_v5 }
 0xc48   :  { %4912 = vrcp.f32 %v2173_v21  ;;  %v1994_v36 = vpop.f32.mrb[68].mxu0 }
 0xc49   :  { %v4903_v61 = vpop.eup %4902  ;;  %v3538_v16 = vmul.f32 -1.442695, %v1994_v36  ;;  %v4212_v28 = vpop.f32.mrb[69].mxu0 }
 0xc4a   :  { %v4905_v53 = vpop.eup %4904  ;;  %v2174_v12 = vadd.f32 1.0, %v4903_v61 }
 0xc4b   :  { %4914 = vpow2.f32 %v3538_v16  ;;  %v2204_v56 = vmul.f32 %v4905_v53, %v2084_v22 }
 0xc4c   :  { %4916 = vrcp.f32 %v2174_v12  ;;  %v1999_v14 = vpop.f32.mrb[70].mxu0 }
 0xc4d   :  { %v4907_v18 = vpop.eup %4906  ;;  %v3539_v30 = vmul.f32 -1.442695, %v1999_v14  ;;  %v4215_v19 = vpop.f32.mrb[71].mxu0 }
 0xc4e   :  { %v4909_v63 = vpop.eup %4908  ;;  %v2175_v20 = vadd.f32 1.0, %v4907_v18  ;;  %v2221_v14 = vpop.permute.xlu0 %2220 }
 0xc4f   :  { %4918 = vpow2.f32 %v3539_v30  ;;  %v2205_v23 = vmul.f32 %v4909_v63, %v5730_v32 }
 0xc50   :  { %4920 = vrcp.f32 %v2175_v20  ;;  %v2004_v55 = vpop.f32.mrb[72].mxu0 }
 0xc51   :  { %v4911_v37 = vpop.eup %4910  ;;  %v4601_v39 = vpack.c.bf16 %v2205_v23, %v2204_v56  ;;  %v3540_v57 = vmul.f32 -1.442695, %v2004_v55  ;;  %v4218_v54 = vpop.f32.mrb[73].mxu0 }
 0xc52   :  { %v4913_v45 = vpop.eup %4912  ;;  %v2176_v49 = vadd.f32 1.0, %v4911_v37 }
 0xc53   :  { %4922 = vpow2.f32 %v3540_v57  ;;  %v2206_v22 = vmul.f32 %v4913_v45, %v5732_v35  ;;  %4602 = vmatpush3.bf16.msra.mxu1 %v4601_v39 }
 0xc54   :  { %4924 = vrcp.f32 %v2176_v49  ;;  %v2009_v25 = vpop.f32.mrb[74].mxu0  ;;  %4603 = vmatprep.subr.bf16.mxu1 %v5039_v0 }
 0xc55   :  { %v4915_v27 = vpop.eup %4914  ;;  %v3541_v31 = vmul.f32 -1.442695, %v2009_v25  ;;  %v4221_v59 = vpop.f32.mrb[75].mxu0 }
 0xc56   :  { %v4917_v32 = vpop.eup %4916  ;;  %v2177_v8 = vadd.f32 1.0, %v4915_v27 }
 0xc57   :  { %4926 = vpow2.f32 %v3541_v31  ;;  %v2207_v33 = vmul.f32 %v4917_v32, %v5734_v38 }
 0xc58   :  { %4928 = vrcp.f32 %v2177_v8  ;;  %v2014_v40 = vpop.f32.mrb[76].mxu0 }
 0xc59   :  { %v4919_v42 = vpop.eup %4918  ;;  %v4604_v10 = vpack.c.bf16 %v2207_v33, %v2206_v22  ;;  %v3542_v44 = vmul.f32 -1.442695, %v2014_v40  ;;  %v4224_v4 = vpop.f32.mrb[77].mxu0 }
 0xc5a   :  { %v4921_v35 = vpop.eup %4920  ;;  %v2178_v46 = vadd.f32 1.0, %v4919_v42 }
 0xc5b   :  { %4930 = vpow2.f32 %v3542_v44  ;;  %v2208_v6 = vmul.f32 %v4921_v35, %v5736_v34  ;;  %4605 = vmatpush3.bf16.msra.mxu1 %v4604_v10 }
 0xc5c   :  { %4932 = vrcp.f32 %v2178_v46  ;;  %4606 = vmatprep.subr.bf16.mxu1 %v5039_v0 }
 0xc5d   :  { %v4923_v48 = vpop.eup %4922 }
 0xc5e   :  { %v4925_v50 = vpop.eup %4924  ;;  %v2179_v62 = vadd.f32 1.0, %v4923_v48 }
 0xc5f   :  { %v2209_v38 = vmul.f32 %v4925_v50, %v5738_v52 }
 0xc60   :  { %4934 = vrcp.f32 %v2179_v62 }
 0xc61   :  { %v4927_v60 = vpop.eup %4926  ;;  %v4607_v24 = vpack.c.bf16 %v2209_v38, %v2208_v6 }
 0xc62   :  { %v4929_v3 = vpop.eup %4928  ;;  %v2180_v7 = vadd.f32 1.0, %v4927_v60 }
 0xc63   :  { %v2210_v9 = vmul.f32 %v4929_v3, %v5740_v43  ;;  %4608 = vmatpush3.bf16.msra.mxu1 %v4607_v24  ;;  %v2356_v3 = vld [vmem:[#allocation4 + $0x200] sm:$0xff] }
 0xc64   :  { %4936 = vrcp.f32 %v2180_v7  ;;  %4609 = vmatprep.subr.bf16.mxu1 %v5039_v0 }
 0xc65   :  { %v4931_v34 = vpop.eup %4930 }
 0xc66   :  { %v4933_v11 = vpop.eup %4932  ;;  %v2181_v26 = vadd.f32 1.0, %v4931_v34  ;;  %v2358_v34 = vld [vmem:[#allocation4 + $0x220] sm:$0xff] }
 0xc67   :  { %v2211_v2 = vmul.f32 %v4933_v11, %v5742_v47  ;;  %v4982_v47 = vld [vmem:[#allocation4 + $0x520] sm:$0xff] }
 0xc68   :  { %4938 = vrcp.f32 %v2181_v26  ;;  %v2360_v26 = vld [vmem:[#allocation4 + $0x240] sm:$0xff] }
 0xc69   :  { %v4610_v5 = vpack.c.bf16 %v2211_v2, %v2210_v9  ;;  %v2357_v9 = vld [vmem:[#allocation4 + $0x210] sm:$0xff] }
 0xc6a   :  { %v4935_v15 = vpop.eup %4934  ;;  %v4619_v11 = vpack.c.bf16 %v2358_v34, %v2357_v9  ;;  %v2764_v34 = vld [vmem:[#allocation4 + $0x2e0] sm:$0xff] }
 0xc6b   :  { %v2212_v52 = vmul.f32 %v4935_v15, %v5744_v13  ;;  %4611 = vmatpush3.bf16.msra.mxu1 %v4610_v5  ;;  %v4983_v13 = vld [vmem:[#allocation4 + $0x530] sm:$0xff]  ;;  %v2362_v15 = vld [vmem:[#allocation4 + $0x260] sm:$0xff] }
 0xc6c   :  { %4612 = vmatprep.subr.bf16.mxu1 %v5039_v0  ;;  %v2361_v5 = vld [vmem:[#allocation4 + $0x250] sm:$0xff] }
 0xc6e   :  { %v4937_v21 = vpop.eup %4936 }
 0xc6f   :  { %v2213_v43 = vmul.f32 %v4937_v21, %v5746_v17  ;;  %v4984_v17 = vld [vmem:[#allocation4 + $0x540] sm:$0xff] }
 0xc70   :  { %v2366_v21 = vld [vmem:[#allocation4 + $0x560] sm:$0xff] }
 0xc71   :  { %v4613_v36 = vpack.c.bf16 %v2213_v43, %v2212_v52  ;;  %v4625_v52 = vpack.c.bf16 %v2362_v15, %v2361_v5  ;;  %v2367_v43 = vld [vmem:[#allocation4 + $0x570] sm:$0xff]  ;;  %v2378_v15 = vld [vmem:[#allocation4 + $0x620] sm:$0x3f] }
 0xc72   :  { %v4939_v61 = vpop.eup %4938 }
 0xc73   :  { %v2214_v16 = vmul.f32 %v4939_v61, %v5748_v29  ;;  %4614 = vmatpush3.bf16.msra.mxu1 %v4613_v36  ;;  %v2219_v29 = vpop.permute.xlu1 %2218  ;;  %v2368_v36 = vld [vmem:[#allocation4 + $0x580] sm:$0xff]  ;;  %v5800_v61 = vpack.c.bf16 %v2367_v43, %v2366_v21 }
 0xc74   :  { %4284 = vmatprep.subr.mxu1 %v5041_v1 }
 0xc75   :  { %4629 = vmatpush3.bf16.msra.mxu0 %v5800_v61 }
 0xc76   :  { %4630 = vmatprep.subr.bf16.mxu0 %v5039_v0 }
 0xc77   :  { %4285 = vmatpush3.msra.mxu1 %v2214_v16  ;;  %v2223_v55 = vpop.permute.xlu1 %2222  ;;  %v2369_v16 = vld [vmem:[#allocation4 + $0x590] sm:$0xff] }
 0xc78   :  { %4287 = vmatmul.mubr.msk.f32.vlgmr.msra.gmra.mrb[90].mxu1 %vm839_vm5, %v4982_v47  ;;  %4615 = vmatprep.subr.bf16.mxu1 %v5039_v0  ;;  %v5803_v47 = vpack.c.bf16 %v2369_v16, %v2368_v36 }
 0xc79   :  { %4289 = vmatprep.mubr.msk.f32.mxu1 %vm5040_vm0, %v5041_v1 }
 0xc7a   :  { %4632 = vmatpush3.bf16.msra.mxu0 %v5803_v47 }
 0xc7b   :  { %4633 = vmatprep.subr.bf16.mxu0 %v5039_v0 }
 0xc7c   :  { %4290 = vmatmul.mubr.msk.f32.gmra.mrb[92].mxu1 %vm839_vm5, %v4983_v13  ;;  %v2370_v13 = vld [vmem:[#allocation4 + $0x5a0] sm:$0xff] }
 0xc7d   :  { %4292 = vmatprep.mubr.msk.f32.mxu1 %vm5040_vm0, %v5041_v1 }
 0xc80   :  { %4293 = vmatmul.mubr.msk.f32.gmra.mrb[94].mxu1 %vm839_vm5, %v4984_v17  ;;  %v2371_v17 = vld [vmem:[#allocation4 + $0x5b0] sm:$0xff] }
 0xc81   :  { %4311 = vmatprep.mubr.msk.f32.mxu1 %vm5040_vm0, %v5041_v1 }
 0xd4b   :  { %v2293_v28 = vpop.f32.mrb[90].mxu1 }
 0xd4c   :  { %v2294_v53 = vadd.f32 %v2293_v28, %v2219_v29  ;;  %v4288_v12 = vpop.f32.mrb[91].mxu1  ;;  %v5807_v29 = vpack.c.bf16 %v2371_v17, %v2370_v13  ;;  %v2372_v28 = vld [vmem:[#allocation4 + $0x5c0] sm:$0xff] }
 0xd4e   :  { %v2307_v56 = vmax.f32 %v2294_v53, 0.0  ;;  %v2373_v53 = vld [vmem:[#allocation4 + $0x5d0] sm:$0xff]  ;;  %4635 = vmatpush3.bf16.msra.mxu0 %v5807_v29 }
 0xd4f   :  { %v2298_v18 = vpop.f32.mrb[92].mxu1  ;;  %v5811_v12 = vpack.c.bf16 %v2373_v53, %v2372_v28  ;;  %4636 = vmatprep.subr.bf16.mxu0 %v5039_v0 }
 0xd50   :  { %v2299_v30 = vadd.f32 %v2298_v18, %v2221_v14  ;;  %v4291_v19 = vpop.f32.mrb[93].mxu1  ;;  %v2310_v63 = vmul.f32 %v2307_v56, %v2307_v56  ;;  %v2375_v14 = vld [vmem:[#allocation4 + $0x5f0] sm:$0xff] }
 0xd52   :  { %v2308_v20 = vmax.f32 %v2299_v30, 0.0  ;;  %v2313_v23 = vsel %vm146_vm3, %v2310_v63, 0.0  ;;  %4638 = vmatpush3.bf16.msra.mxu0 %v5811_v12 }
 0xd53   :  { %2314 = vadd.xlane.f32.xlu0 %v2313_v23  ;;  %v2303_v37 = vpop.f32.mrb[94].mxu1  ;;  %4639 = vmatprep.subr.bf16.mxu0 %v5039_v0 }
 0xd54   :  { %v2304_v39 = vadd.f32 %v2303_v37, %v2223_v55  ;;  %v2311_v57 = vmul.f32 %v2308_v20, %v2308_v20  ;;  %v4294_v54 = vpop.f32.mrb[95].mxu1 }
 0xd56   :  { %v2309_v45 = vmax.f32 %v2304_v39, 0.0  ;;  %v2316_v49 = vsel %vm146_vm3, %v2311_v57, 0.0 }
 0xd57   :  { %2317 = vadd.xlane.f32.xlu1 %v2316_v49 }
 0xd58   :  { %v2312_v22 = vmul.f32 %v2309_v45, %v2309_v45 }
 0xd5a   :  { %v2319_v25 = vsel %vm146_vm3, %v2312_v22, 0.0 }
 0xd5b   :  { %2320 = vadd.xlane.f32.xlu0 %v2319_v25  ;;  %v2376_v25 = vld [vmem:[#allocation4 + $0x600] sm:$0xff] }
 0xde0   :  { %v2315_v27 = vpop.xlane.xlu0 %2314 }
 0xde1   :  { %v2322_v31 = vmax.f32 %v2315_v27, 1e-24  ;;  %v2377_v27 = vld [vmem:[#allocation4 + $0x610] sm:$0xff] }
 0xde3   :  { %4940 = vrsqrt.f32 %v2322_v31  ;;  %v5832_v31 = vpack.c.bf16 %v2377_v27, %v2376_v25 }
 0xde4   :  { %v2318_v59 = vpop.xlane.xlu1 %2317 }
 0xde5   :  { %v2323_v32 = vmax.f32 %v2318_v59, 1e-24  ;;  %v2363_v59 = vld [vmem:[#allocation4 + $0x270] ss:$0 sm:$0xff] }
 0xde7   :  { %4942 = vrsqrt.f32 %v2323_v32 }
 0xde8   :  { %v2321_v8 = vpop.xlane.xlu0 %2320 }
 0xde9   :  { %v2324_v33 = vmax.f32 %v2321_v8, 1e-24 }
 0xdeb   :  { %4944 = vrsqrt.f32 %v2324_v33 }
 0xded   :  { %v4941_v40 = vpop.eup %4940 }
 0xdee   :  { %v2328_v42 = vmul.f32 %v4941_v40, %v2307_v56  ;;  %v2374_v56 = vld [vmem:[#allocation4 + $0x5e0] sm:$0xff] }
 0xdef   :  { %v5815_v18 = vpack.c.bf16 %v2375_v14, %v2374_v56 }
 0xdf0   :  { %v5779_v10 = vadd.f32 %v2328_v42, %v5592_v41 }
 0xdf1   :  { %v4943_v44 = vpop.eup %4942  ;;  %4641 = vmatpush3.bf16.msra.mxu0 %v5815_v18 }
 0xdf2   :  { %v2334_v4 = vmul.f32 %v5779_v10, %v5779_v10  ;;  %v2329_v35 = vmul.f32 %v4943_v44, %v2308_v20  ;;  %4642 = vmatprep.subr.bf16.mxu0 %v5039_v0 }
 0xdf4   :  { %v2337_v46 = vsel %vm146_vm3, %v2334_v4, 0.0  ;;  %v5785_v6 = vadd.f32 %v2329_v35, %v5598_v58  ;;  %v2355_v58 = vld [vmem:[#allocation4 + $0x1f0] sm:$0xff] }
 0xdf5   :  { %v4945_v48 = vpop.eup %4944  ;;  %2338 = vadd.xlane.f32.xlu0 %v2337_v46  ;;  %v4616_v7 = vpack.c.bf16 %v2356_v3, %v2355_v58  ;;  %4644 = vmatpush3.bf16.msra.mxu0 %v5832_v31  ;;  %v2762_v3 = vld [vmem:[#allocation4 + $0x2c0] sm:$0xff] }
 0xdf6   :  { %v2335_v50 = vmul.f32 %v5785_v6, %v5785_v6  ;;  %v2330_v62 = vmul.f32 %v4945_v48, %v2309_v45  ;;  %4663 = vmatprep.subr.bf16.mxu0 %v5039_v0 }
 0xdf7   :  { %4617 = vmatpush3.bf16.msra.mxu1 %v4616_v7  ;;  %v2763_v7 = vld [vmem:[#allocation4 + $0x2d0] sm:$0xff] }
 0xdf8   :  { %v2340_v38 = vsel %vm146_vm3, %v2335_v50, 0.0  ;;  %v5791_v41 = vadd.f32 %v2330_v62, %v5604_v51  ;;  %4618 = vmatprep.subr.bf16.mxu1 %v5039_v0  ;;  %v2359_v51 = vld [vmem:[#allocation4 + $0x230] sm:$0xff]  ;;  %v4670_v9 = vpack.c.bf16 %v2763_v7, %v2762_v3 }
 0xdf9   :  { %2341 = vadd.xlane.f32.xlu0 %v2340_v38  ;;  %v4622_v2 = vpack.c.bf16 %v2360_v26, %v2359_v51  ;;  %v2766_v26 = vld [vmem:[#allocation4 + $0x300] sm:$0xff]  ;;  %v2365_v3 = vld [vmem:[#allocation4 + $0x290] ss:$0 sm:$0xff] }
 0xdfa   :  { %v2336_v60 = vmul.f32 %v5791_v41, %v5791_v41 }
 0xdfb   :  { %4620 = vmatpush3.bf16.msra.mxu1 %v4619_v11  ;;  %v2765_v11 = vld [vmem:[#allocation4 + $0x2f0] sm:$0xff] }
 0xdfc   :  { %v2343_v24 = vsel %vm146_vm3, %v2336_v60, 0.0  ;;  %4621 = vmatprep.subr.bf16.mxu1 %v5039_v0  ;;  %v2761_v60 = vld [vmem:[#allocation4 + $0x2b0] sm:$0xff]  ;;  %v4673_v51 = vpack.c.bf16 %v2765_v11, %v2764_v34 }
 0xdfd   :  { %2344 = vadd.xlane.f32.xlu1 %v2343_v24  ;;  %v2759_v24 = vld [vmem:[#allocation4 + $0x550] sm:$0x7] }
 0xdff   :  { %4623 = vmatpush3.bf16.msra.mxu1 %v4622_v2  ;;  %v2767_v2 = vld [vmem:[#allocation4 + $0x310] sm:$0xff] }
 0xe00   :  { %4624 = vmatprep.subr.bf16.mxu1 %v5039_v0  ;;  %v4676_v5 = vpack.c.bf16 %v2767_v2, %v2766_v26 }
 0xe03   :  { %4626 = vmatpush3.bf16.msra.mxu1 %v4625_v52 }
 0xe04   :  { %4353 = vmatprep.subr.mxu1 %v5041_v1 }
 0xe82   :  { %v2339_v30 = vpop.xlane.xlu0 %2338 }
 0xe83   :  { %v2346_v19 = vmax.f32 %v2339_v30, 1e-24 }
 0xe85   :  { %4946 = vrsqrt.f32 %v2346_v19 }
 0xe86   :  { %v2342_v63 = vpop.xlane.xlu0 %2341 }
 0xe87   :  { %v2347_v20 = vmax.f32 %v2342_v63, 1e-24 }
 0xe89   :  { %4948 = vrsqrt.f32 %v2347_v20  ;;  %v2364_v20 = vld [vmem:[#allocation4 + $0x280] ss:$0 sm:$0xff] }
 0xe8a   :  { %v2345_v23 = vpop.xlane.xlu1 %2344 }
 0xe8b   :  { %v2348_v55 = vmax.f32 %v2345_v23, 1e-24 }
 0xe8d   :  { %4950 = vrsqrt.f32 %v2348_v55 }
 0xe8f   :  { %v4947_v37 = vpop.eup %4946 }
 0xe90   :  { %v2352_v39 = vmul.f32 %v4947_v37, %v5779_v10 }
 0xe92   :  { %4312 = vmatmul.mubr.msk.f32.vlgmr.msra.gmra.mrb[96].mxu1 %vm146_vm3, %v2352_v39 }
 0xe93   :  { %v4949_v57 = vpop.eup %4948  ;;  %4314 = vmatprep.mubr.msk.f32.mxu1 %vm5040_vm0, %v5041_v1  ;;  %4354 = vmatpush3.msk.msra.mxu1 %vm2580_vm7, %v2378_v15  ;;  %v3013_v15 = vld [vmem:[#allocation4 + $0x6a0] sm:$0xf] }
 0xe94   :  { %v2353_v54 = vmul.f32 %v4949_v57, %v5785_v6  ;;  %4645 = vmatprep.subr.bf16.mxu1 %v5039_v0 }
 0xe96   :  { %4315 = vmatmul.mubr.msk.f32.gmra.mrb[98].mxu1 %vm146_vm3, %v2353_v54  ;;  %v4664_v45 = vpack.c.bf16 %v2353_v54, %v2352_v39 }
 0xe97   :  { %v4951_v49 = vpop.eup %4950  ;;  %4317 = vmatprep.mubr.msk.f32.mxu1 %vm5040_vm0, %v5041_v1 }
 0xe98   :  { %v2354_v22 = vmul.f32 %v4951_v49, %v5791_v41  ;;  %v2760_v41 = vld [vmem:[#allocation4 + $0x2a0] sm:$0xff] }
 0xe99   :  { %v4667_v58 = vpack.c.bf16 %v2761_v60, %v2760_v41 }
 0xe9a   :  { %4318 = vmatmul.mubr.msk.f32.gmra.mrb[100].mxu1 %vm146_vm3, %v2354_v22 }
 0xe9b   :  { %4355 = vmatprep.mubr.msk.f32.mxu1 %vm5040_vm0, %v5041_v1 }
 0xf65   :  { %v2454_v32 = vpop.f32.mrb[96].mxu1 }
 0xf66   :  { %v2455_v8 = vadd.f32 %v2454_v32, %v2363_v59  ;;  %v4313_v33 = vpop.f32.mrb[97].mxu1 }
 0xf67   :  { %v2770_v33 = vld [vmem:[#allocation4 + $0x340] sm:$0xff] }
 0xf68   :  { %v5836_v40 = vmax.f32 %v2455_v8, 0.0  ;;  %v2769_v8 = vld [vmem:[#allocation4 + $0x330] sm:$0xff] }
 0xf69   :  { %v2459_v42 = vpop.f32.mrb[98].mxu1 }
 0xf6a   :  { %v2471_v10 = vmul.f32 %v5836_v40, %v5836_v40  ;;  %v2460_v44 = vadd.f32 %v2459_v42, %v2363_v59  ;;  %v4316_v4 = vpop.f32.mrb[99].mxu1  ;;  %v2771_v42 = vld [vmem:[#allocation4 + $0x350] sm:$0xff] }
 0xf6b   :  { %v2773_v4 = vld [vmem:[#allocation4 + $0x370] sm:$0xff] }
 0xf6c   :  { %v5840_v35 = vmax.f32 %v2460_v44, 0.0  ;;  %4345 = vmatmul.mubr.msk.f32.vlgmr.msra.gmra.mrb[78].mxu0 %vm2474_vm6, %v2471_v10  ;;  %v2772_v10 = vld [vmem:[#allocation4 + $0x360] sm:$0xff] }
 0xf6d   :  { %4665 = vmatpush3.bf16.msra.mxu0 %v4664_v45  ;;  %v2464_v46 = vpop.f32.mrb[100].mxu1  ;;  %4347 = vmatprep.mubr.msk.f32.mxu0 %vm5040_vm0, %v5041_v1  ;;  %v4682_v44 = vpack.c.bf16 %v2772_v10, %v2771_v42 }
 0xf6e   :  { %v2472_v6 = vmul.f32 %v5840_v35, %v5840_v35  ;;  %v2465_v48 = vadd.f32 %v2464_v46, %v2363_v59  ;;  %v4319_v50 = vpop.f32.mrb[101].mxu1  ;;  %4401 = vmatprep.subr.mxu0 %v5041_v1 }
 0xf70   :  { %v5848_v62 = vmax.f32 %v2465_v48, 0.0  ;;  %4348 = vmatmul.mubr.msk.f32.gmra.mrb[80].mxu0 %vm2474_vm6, %v2472_v6  ;;  %v2775_v6 = vld [vmem:[#allocation4 + $0x390] sm:$0xff]  ;;  %v2776_v48 = vld [vmem:[#allocation4 + $0x3a0] sm:$0xff] }
 0xf71   :  { %4402 = vmatpush3.msra.mxu0 %v2354_v22  ;;  %4350 = vmatprep.mubr.msk.f32.mxu0 %vm5040_vm0, %v5041_v1  ;;  %v4688_v50 = vpack.c.bf16 %v2776_v48, %v2775_v6 }
 0xf72   :  { %v2473_v38 = vmul.f32 %v5848_v62, %v5848_v62  ;;  %4666 = vmatprep.subr.bf16.mxu0 %v5039_v0 }
 0xf74   :  { %4351 = vmatmul.mubr.msk.f32.gmra.mrb[82].mxu0 %vm2474_vm6, %v2473_v38 }
 0xf75   :  { %4403 = vmatprep.mubr.msk.f32.mxu0 %vm5040_vm0, %v5041_v1 }
 0xf78   :  { %4404 = vmatmul.mubr.msk.f32.vlgmr.msra.gmra.mrb[84].mxu0 %vm323_vm4, %v2759_v24 }
 0xf79   :  { %4668 = vmatpush3.bf16.msra.mxu0 %v4667_v58  ;;  %4422 = vmatprep.mubr.msk.f32.mxu0 %vm5040_vm0, %v5041_v1 }
 0xf7a   :  { %4669 = vmatprep.subr.bf16.mxu0 %v5039_v0 }
 0xf7d   :  { %4671 = vmatpush3.bf16.msra.mxu0 %v4670_v9 }
 0xf7e   :  { %4672 = vmatprep.subr.bf16.mxu0 %v5039_v0 }
 0xf81   :  { %4674 = vmatpush3.bf16.msra.mxu0 %v4673_v51 }
 0xf82   :  { %4675 = vmatprep.subr.bf16.mxu0 %v5039_v0 }
 0xf85   :  { %4677 = vmatpush3.bf16.msra.mxu0 %v4676_v5  ;;  %v3006_v5 = vld [vmem:[#allocation4 + $0x630] sm:$0xff] }
 0xf86   :  { %4690 = vmatprep.subr.bf16.mxu0 %v5039_v0 }
0x103f   :  { %v2550_v52 = vpop.f32.mrb[78].mxu0 }
0x1040   :  { %v2564_v21 = vmax.f32 %v2550_v52, 1e-24  ;;  %v4346_v43 = vpop.f32.mrb[79].mxu0  ;;  %v3007_v52 = vld [vmem:[#allocation4 + $0x640] sm:$0xff] }
0x1041   :  { %v2777_v43 = vld [vmem:[#allocation4 + $0x3b0] ss:$0 sm:$0xff] }
0x1042   :  { %4952 = vrsqrt.f32 %v2564_v21  ;;  %v3008_v21 = vld [vmem:[#allocation4 + $0x650] sm:$0xff] }
0x1043   :  { %v2555_v36 = vpop.f32.mrb[80].mxu0 }
0x1044   :  { %v2565_v16 = vmax.f32 %v2555_v36, 1e-24  ;;  %v4349_v13 = vpop.f32.mrb[81].mxu0 }
0x1046   :  { %4954 = vrsqrt.f32 %v2565_v16 }
0x1047   :  { %v2560_v17 = vpop.f32.mrb[82].mxu0 }
0x1048   :  { %v2566_v28 = vmax.f32 %v2560_v17, 1e-24  ;;  %v4352_v53 = vpop.f32.mrb[83].mxu0  ;;  %v3009_v17 = vld [vmem:[#allocation4 + $0x660] sm:$0xff] }
0x1049   :  { %v3011_v53 = vld [vmem:[#allocation4 + $0x680] sm:$0xff] }
0x104a   :  { %4956 = vrsqrt.f32 %v2566_v28  ;;  %v3010_v28 = vld [vmem:[#allocation4 + $0x670] sm:$0xff] }
0x104b   :  { %v2847_v56 = vpop.f32.mrb[84].mxu0 }
0x104c   :  { %v4953_v14 = vpop.eup %4952  ;;  %4423 = vmatmul.mubr.msk.f32.vlgmr.msra.gmra.mrb[86].mxu0 %vm146_vm3, %v2847_v56  ;;  %v4405_v30 = vpop.f32.mrb[85].mxu0 }
0x104d   :  { %4356 = vmatmul.mubr.msk.f32.vlgmr.msra.gmra.mrb[102].mxu1 %vm2570_vm8, %v4953_v14  ;;  %4450 = vmatprep.mubr.msk.f32.mxu0 %vm5040_vm0, %v5041_v1 }
0x104e   :  { %4358 = vmatprep.mubr.msk.f32.mxu1 %vm5040_vm0, %v5041_v1  ;;  %4647 = vmatpush3.bf16.msra.mxu1 %v5800_v61  ;;  %v2768_v61 = vld [vmem:[#allocation4 + $0x320] ss:$0 sm:$0xff] }
0x104f   :  { %4648 = vmatprep.subr.bf16.mxu1 %v5039_v0 }
0x1050   :  { %v4955_v19 = vpop.eup %4954 }
0x1051   :  { %4359 = vmatmul.mubr.msk.f32.gmra.mrb[104].mxu1 %vm2570_vm8, %v4955_v19 }
0x1052   :  { %4361 = vmatprep.mubr.msk.f32.mxu1 %vm5040_vm0, %v5041_v1  ;;  %4650 = vmatpush3.bf16.msra.mxu1 %v5803_v47 }
0x1053   :  { %4651 = vmatprep.subr.bf16.mxu1 %v5039_v0 }
0x1054   :  { %v4957_v63 = vpop.eup %4956 }
0x1055   :  { %4362 = vmatmul.mubr.msk.f32.gmra.mrb[106].mxu1 %vm2570_vm8, %v4957_v63 }
0x1056   :  { %4653 = vmatpush3.bf16.msra.mxu1 %v5807_v29  ;;  %4388 = vmatprep.mubr.msk.f32.mxu1 %vm5040_vm0, %v5041_v1 }
0x1057   :  { %4654 = vmatprep.subr.bf16.mxu1 %v5039_v0 }
0x105a   :  { %4656 = vmatpush3.bf16.msra.mxu1 %v5811_v12 }
0x105b   :  { %4657 = vmatprep.subr.bf16.mxu1 %v5039_v0 }
0x105e   :  { %4659 = vmatpush3.bf16.msra.mxu1 %v5815_v18 }
0x105f   :  { %4660 = vmatprep.subr.bf16.mxu1 %v5039_v0 }
0x1062   :  { %4662 = vmatpush3.bf16.msra.mxu1 %v5832_v31 }
0x1063   :  { %4678 = vmatprep.subr.bf16.mxu1 %v5039_v0 }
0x111f   :  { %v2920_v47 = vpop.f32.mrb[86].mxu0 }
0x1120   :  { %v2921_v29 = vadd.f32 %v2920_v47, %v2768_v61  ;;  %v2650_v23 = vpop.f32.mrb[102].mxu1  ;;  %v4424_v55 = vpop.f32.mrb[87].mxu0  ;;  %v3012_v47 = vld [vmem:[#allocation4 + $0x690] sm:$0x3f] }
0x1121   :  { %v2664_v37 = vmul.f32 %v2650_v23, %v5836_v40  ;;  %v4357_v39 = vpop.f32.mrb[103].mxu1  ;;  %v4679_v40 = vpack.c.bf16 %v2770_v33, %v2769_v8 }
0x1122   :  { %v2924_v12 = vmax.f32 %v2921_v29, 0.0 }
0x1123   :  { %v2667_v57 = vmul.f32 %v2664_v37, %v2364_v20 }
0x1124   :  { %v2655_v54 = vpop.f32.mrb[104].mxu1  ;;  %v2925_v18 = vmul.f32 %v2924_v12, %v2924_v12 }
0x1125   :  { %v2665_v45 = vmul.f32 %v2655_v54, %v5840_v35  ;;  %v4360_v49 = vpop.f32.mrb[105].mxu1  ;;  %4389 = vmatmul.mubr.msk.f32.vlgmr.msra.gmra.mrb[108].mxu1 %vm2474_vm6, %v2667_v57  ;;  %v2774_v35 = vld [vmem:[#allocation4 + $0x380] sm:$0xff] }
0x1126   :  { %v2927_v22 = vsel %vm2926_vm9, %v2925_v18, 0.0  ;;  %4391 = vmatprep.mubr.msk.f32.mxu1 %vm5040_vm0, %v5041_v1  ;;  %4680 = vmatpush3.bf16.msra.mxu1 %v4679_v40  ;;  %v4685_v46 = vpack.c.bf16 %v2774_v35, %v2773_v4 }
0x1127   :  { %v2668_v25 = vmul.f32 %v2665_v45, %v2364_v20  ;;  %2928 = vadd.xlane.f32.xlu0 %v2927_v22  ;;  %4681 = vmatprep.subr.bf16.mxu1 %v5039_v0 }
0x1128   :  { %v2660_v27 = vpop.f32.mrb[106].mxu1 }
0x1129   :  { %v2666_v31 = vmul.f32 %v2660_v27, %v5848_v62  ;;  %v4363_v59 = vpop.f32.mrb[107].mxu1  ;;  %4392 = vmatmul.mubr.msk.f32.gmra.mrb[110].mxu1 %vm2474_vm6, %v2668_v25 }
0x112a   :  { %4394 = vmatprep.mubr.msk.f32.mxu1 %vm5040_vm0, %v5041_v1  ;;  %4683 = vmatpush3.bf16.msra.mxu1 %v4682_v44 }
0x112b   :  { %v2669_v32 = vmul.f32 %v2666_v31, %v2364_v20  ;;  %4684 = vmatprep.subr.bf16.mxu1 %v5039_v0 }
0x112d   :  { %4395 = vmatmul.mubr.msk.f32.gmra.mrb[112].mxu1 %vm2474_vm6, %v2669_v32 }
0x112e   :  { %4441 = vmatprep.mubr.msk.f32.mxu1 %vm5040_vm0, %v5041_v1  ;;  %4686 = vmatpush3.bf16.msra.mxu1 %v4685_v46 }
0x112f   :  { %4687 = vmatprep.subr.bf16.mxu1 %v5039_v0 }
0x1132   :  { %4689 = vmatpush3.bf16.msra.mxu1 %v4688_v50 }
0x1133   :  { %4459 = vmatprep.subr.mxu1 %v5041_v1 }
0x11b4   :  { %v2929_v62 = vpop.xlane.xlu0 %2928 }
0x11b5   :  { %v2930_v38 = vmax.f32 %v2929_v62, 1e-24 }
0x11b7   :  { %4958 = vrsqrt.f32 %v2930_v38 }
0x11c1   :  { %v4959_v41 = vpop.eup %4958 }
0x11c2   :  { %v2932_v60 = vmul.f32 %v4959_v41, %v2924_v12 }
0x11c4   :  { %4442 = vmatmul.mubr.msk.f32.vlgmr.msra.gmra.mrb[114].mxu1 %vm146_vm3, %v2932_v60 }
0x11c5   :  { %4461 = vmatprep.mubr.msk.f32.mxu1 %vm5040_vm0, %v5041_v1 }
0x11f8   :  { %v2745_v24 = vpop.f32.mrb[108].mxu1 }
0x11f9   :  { %v4390_v58 = vpop.f32.mrb[109].mxu1  ;;  %v2746_v7 = vadd.f32 %v2745_v24, %v2365_v3 }
0x11fc   :  { %v2750_v0 = vpop.f32.mrb[110].mxu1 }
0x11fd   :  { %v2751_v9 = vadd.f32 %v2750_v0, %v2365_v3  ;;  %v4393_v34 = vpop.f32.mrb[111].mxu1 }
0x11ff   :  { %v4691_v11 = vpack.c.bf16 %v2751_v9, %v2746_v7 }
0x1200   :  { %v2755_v51 = vpop.f32.mrb[112].mxu1 }
0x1201   :  { %v4396_v26 = vpop.f32.mrb[113].mxu1  ;;  %4692 = vmatpush3.bf16.msra.mxu0 %v4691_v11  ;;  %v2756_v2 = vadd.f32 %v2755_v51, %v2365_v3 }
0x1202   :  { %4448 = vmatprep.subr.mxu0 %v5041_v1 }
0x1205   :  { %4449 = vmatpush3.msra.mxu0 %v2756_v2 }
0x1206   :  { %4470 = vmatprep.subr.mxu0 %v5041_v1  ;;  %4451 = vmatmul.mubr.msk.f32.vlgmr.msra.gmra.mrb[88].mxu0 %vm323_vm4, %v3006_v5 }
0x1207   :  { %4453 = vmatprep.mubr.msk.f32.mxu0 %vm5040_vm0, %v5041_v1  ;;  %4471 = vmatpush3.msk.msra.mxu0 %vm56_vm1, %v3013_v15 }
0x1208   :  { %4481 = vmatprep.subr.mxu0 %v5041_v1 }
0x120a   :  { %4454 = vmatmul.mubr.msk.f32.gmra.mrb[90].mxu0 %vm323_vm4, %v3007_v52 }
0x120b   :  { %4456 = vmatprep.mubr.msk.f32.mxu0 %vm5040_vm0, %v5041_v1 }
0x120e   :  { %4457 = vmatmul.mubr.msk.f32.gmra.mrb[92].mxu0 %vm323_vm4, %v3008_v21 }
0x120f   :  { %4472 = vmatprep.mubr.msk.f32.mxu0 %vm5040_vm0, %v5041_v1 }
0x1297   :  { %v3002_v36 = vpop.f32.mrb[114].mxu1 }
0x1298   :  { %v3003_v16 = vadd.f32 %v3002_v36, %v2777_v43  ;;  %v4443_v13 = vpop.f32.mrb[115].mxu1 }
0x129a   :  { %4460 = vmatpush3.msk.msra.mxu1 %vm3113_vm10, %v3003_v16 }
0x129b   :  { %4462 = vmatmul.mubr.msk.f32.vlgmr.msra.gmra.mrb[116].mxu1 %vm3103_vm11, %v3009_v17 }
0x129c   :  { %4464 = vmatprep.mubr.msk.f32.mxu1 %vm5040_vm0, %v5041_v1 }
0x129f   :  { %4465 = vmatmul.mubr.msk.f32.gmra.mrb[118].mxu1 %vm3103_vm11, %v3010_v28 }
0x12a0   :  { %4467 = vmatprep.mubr.msk.f32.mxu1 %vm5040_vm0, %v5041_v1 }
0x12a3   :  { %4468 = vmatmul.mubr.msk.f32.gmra.mrb[120].mxu1 %vm3103_vm11, %v3011_v53 }
0x12d9   :  { %v3089_v56 = vpop.f32.mrb[88].mxu0 }
0x12da   :  { %v4452_v14 = vpop.f32.mrb[89].mxu0 }
0x12dd   :  { %v3094_v30 = vpop.f32.mrb[90].mxu0 }
0x12de   :  { %v4455_v19 = vpop.f32.mrb[91].mxu0 }
0x12e1   :  { %v3099_v63 = vpop.f32.mrb[92].mxu0 }
0x12e2   :  { %v4458_v61 = vpop.f32.mrb[93].mxu0 }
0x136e   :  { %v3183_v29 = vpop.f32.mrb[116].mxu1 }
0x136f   :  { %4473 = vmatmul.mubr.msk.f32.vlgmr.msra.gmra.mrb[94].mxu0 %vm3197_vm12, %v3183_v29  ;;  %v4463_v20 = vpop.f32.mrb[117].mxu1 }
0x1370   :  { %4475 = vmatprep.mubr.msk.f32.mxu0 %vm5040_vm0, %v5041_v1  ;;  %4482 = vmatpush3.msk.msra.mxu0 %vm2580_vm7, %v3012_v47 }
0x1372   :  { %v3188_v23 = vpop.f32.mrb[118].mxu1 }
0x1373   :  { %4476 = vmatmul.mubr.msk.f32.gmra.mrb[96].mxu0 %vm3197_vm12, %v3188_v23  ;;  %v4466_v55 = vpop.f32.mrb[119].mxu1 }
0x1374   :  { %4478 = vmatprep.mubr.msk.f32.mxu0 %vm5040_vm0, %v5041_v1 }
0x1376   :  { %v3193_v37 = vpop.f32.mrb[120].mxu1 }
0x1377   :  { %4479 = vmatmul.mubr.msk.f32.gmra.mrb[98].mxu0 %vm3197_vm12, %v3193_v37  ;;  %v4469_v39 = vpop.f32.mrb[121].mxu1 }
0x1378   :  { %4483 = vmatprep.mubr.msk.f32.mxu0 %vm5040_vm0, %v5041_v1 }
0x137b   :  { %4484 = vmatmul.mubr.msk.f32.vlgmr.msra.gmra.mrb[94].mxu0 %vm2570_vm8, %v3089_v56 }
0x137c   :  { %4486 = vmatprep.mubr.msk.f32.mxu0 %vm5040_vm0, %v5041_v1 }
0x137f   :  { %4487 = vmatmul.mubr.msk.f32.gmra.mrb[96].mxu0 %vm2570_vm8, %v3094_v30 }
0x1380   :  { %4489 = vmatprep.mubr.msk.f32.mxu0 %vm5040_vm0, %v5041_v1 }
0x1383   :  { %4490 = vmatmul.mubr.msk.f32.gmra.mrb[98].mxu0 %vm2570_vm8, %v3099_v63 }
0x144e   :  { %v3368_v12 = vpop.f32.mrb[94].mxu0 }
0x144f   :  { %3383 = vst.msk [vmem:[%s5953_s2] sm:$0xff] %vm3382_vm13, %v3368_v12  ;;  %v4485_v57 = vpop.f32.mrb[95].mxu0 }
0x1452   :  { %v3373_v54 = vpop.f32.mrb[96].mxu0 }
0x1453   :  { %3384 = vst.msk [vmem:[%s5953_s2 + $0x8] sm:$0xff] %vm3382_vm13, %v3373_v54  ;;  %v4488_v18 = vpop.f32.mrb[97].mxu0 }
0x1456   :  { %v3378_v45 = vpop.f32.mrb[98].mxu0 }
0x1457   :  { %3385 = vst.msk [vmem:[%s5953_s2 + $0x10] sm:$0xff] %vm3382_vm13, %v3378_v45  ;;  %v4491_v1 = vpop.f32.mrb[99].mxu0 }
0x1458   :  { %3390 = vsyncpa [#allocation3], 1 }
0x1459   :  { %3391 = vsyncpa [#allocation5], 1 }

</bundles_post_ra>
